<compile_context>
chip_gen: v6e
topology: v6e:2x2x1
jax: 0.10.0
libtpu: 0.0.40
codegen_flags: <defaults>
</compile_context>

<pallas_src>
import numpy as np
import jax
import jax.numpy as jnp
from jax import lax
from jax.experimental import pallas as pl
from jax.experimental.pallas import tpu as pltpu

EPS = 1e-5                         # nn.BatchNorm2d default eps
CONV_DTYPE = jnp.bfloat16          # MXU operand dtype for the conv matmuls
CONV_PRECISION = None if CONV_DTYPE == jnp.bfloat16 else lax.Precision.HIGHEST


# ----------------------- parameter packing (done once, batch-size independent) -----------------------
def pack_genres_params(raw, W, C):
    """Convert GenRes parameters into the lane-packed kernel layout.

    raw:  w1/w2 (3,3,Cin,Cout) HWIO conv weights, b1/b2 (C,), g*/be* (C,) BN affine,
          a (1,) shared PReLU slope.   (PyTorch OIHW weights would be transposed (2,3,1,0).)
    """
    WC = W * C

    def band(w_hwio):
        # (3,3,Cin,Cout) -> (3*W*C, W*C) block-banded matrix: for a lane-packed image row
        # r[w_in*C + cin], (r @ B_dy) is the dy-tap contribution of the SAME 3x3 conv at
        # every (w_out, cout) lane.  dx shifts and W zero-padding are implicit in the band.
        wi = jnp.arange(W)[:, None]                    # w_in
        wo = jnp.arange(W)[None, :]                    # w_out
        dx = wi - wo + 1                               # tap connecting w_in -> w_out
        valid = (dx >= 0) & (dx <= 2)
        g = jnp.take(w_hwio, jnp.clip(dx, 0, 2), axis=1)            # (3, W, W, Cin, Cout)
        g = jnp.where(valid[None, :, :, None, None], g, 0.0)
        g = jnp.transpose(g, (0, 1, 3, 2, 4))                       # (dy, w_in, cin, w_out, cout)
        return g.reshape(3 * WC, WC).astype(CONV_DTYPE)

    def lanes(v):                                      # per-channel (C,) -> per-lane (1, W*C)
        return jnp.tile(jnp.asarray(v, jnp.float32).reshape(-1), W).reshape(1, WC)

    lane_c = jnp.arange(WC) % C
    chan_sel = (lane_c[:, None] == lane_c[None, :]).astype(jnp.float32)   # (WC, WC) selector

    return dict(
        R=chan_sel,
        w1=band(raw["w1"]), b1=lanes(raw["b1"]),
        w2=band(raw["w2"]), b2=lanes(raw["b2"]),
        g1=lanes(raw["g1"]), be1=lanes(raw["be1"]),
        g2=lanes(raw["g2"]), be2=lanes(raw["be2"]),
        a=jnp.asarray(raw["a"], jnp.float32).reshape(1),
    )


# ------------------------------------------ forward ------------------------------------------
def genres_forward_nhwc(x_nhwc, pk):
    """GenRes forward.  x_nhwc: (N, H, W, C).  Whole block = one pallas_call, no scratch."""
    N, H, W, C = x_nhwc.shape
    NH, WC = N * H, W * C
    inv_nhw = 1.0 / float(N * H * W)
    x2 = x_nhwc.reshape(NH, WC).astype(jnp.float32)    # lane packing is a pure reshape

    def kernel(x_ref, r_ref, g1_ref, be1_ref, w1_ref, b1_ref,
               g2_ref, be2_ref, w2_ref, b2_ref, a_ref, o_ref):
        x = x_ref[...]
        Rm = r_ref[...]
        a = a_ref[0]                                   # shared PReLU slope (SMEM scalar)

        # hoisted once: per-row "image edge" masks and a zero row for the dy shifts
        row = lax.broadcasted_iota(jnp.int32, (NH, WC), 0) % H
        first_row = row == 0
        last_row = row == (H - 1)
        zrow = jnp.zeros((1, WC), jnp.float32)

        def bn_prelu(t, g, be):
            # training-mode BN over (N,H,W) per channel with biased variance.
            s = jnp.concatenate([jnp.sum(t, axis=0, keepdims=True),
                                 jnp.sum(t * t, axis=0, keepdims=True)], axis=0)   # (2, WC)
            # channel reduce + lane re-broadcast in one tiny MXU op; HIGHEST keeps the
            # statistics exact f32 (cost of a (2,WC)x(WC,WC) dot is negligible).
            mom = jnp.dot(s, Rm, preferred_element_type=jnp.float32,
                          precision=lax.Precision.HIGHEST) * inv_nhw
            mean = mom[0:1, :]
            var = mom[1:2, :] - mean * mean
            scale = g * lax.rsqrt(var + EPS)
            shift = be - mean * scale
            y = t * scale + shift
            return jnp.where(y >= 0, y, a * y)          # PReLU (single shared slope)

        def conv3x3(t, w, b):
            # dy = -1 / +1 rows via in-register sublane shift + per-image edge mask;
            # dx taps and channel mixing live in the pre-packed banded weight matrix.
            up = jnp.concatenate([zrow, t[:-1, :]], axis=0)      # row h-1
            dn = jnp.concatenate([t[1:, :], zrow], axis=0)       # row h+1
            up = jnp.where(first_row, 0.0, up)                   # zero padding at image edges
            dn = jnp.where(last_row, 0.0, dn)
            xcat = jnp.concatenate([up.astype(CONV_DTYPE),
                                    t.astype(CONV_DTYPE),
                                    dn.astype(CONV_DTYPE)], axis=1)    # (NH, 3*WC)
            return jnp.dot(xcat, w, preferred_element_type=jnp.float32,
                           precision=CONV_PRECISION) + b

        h1 = bn_prelu(x, g1_ref[...], be1_ref[...])
        c1 = conv3x3(h1, w1_ref[...], b1_ref[...])
        h2 = bn_prelu(c1, g2_ref[...], be2_ref[...])
        c2 = conv3x3(h2, w2_ref[...], b2_ref[...])
        o_ref[...] = x + c2                             # residual

    vmem = pl.BlockSpec(memory_space=pltpu.MemorySpace.VMEM)
    smem = pl.BlockSpec(memory_space=pltpu.MemorySpace.SMEM)
    out = pl.pallas_call(
        kernel,
        out_shape=jax.ShapeDtypeStruct((NH, WC), jnp.float32),
        in_specs=[vmem] * 10 + [smem],
        out_specs=vmem,
    )(x2, pk["R"], pk["g1"], pk["be1"], pk["w1"], pk["b1"],
      pk["g2"], pk["be2"], pk["w2"], pk["b2"], pk["a"])
    return out.reshape(N, H, W, C).astype(x_nhwc.dtype)


def genres_forward_nchw(x_nchw, pk):
    # Compatibility shim for the PyTorch NCHW convention.  Perf-sensitive callers should use
    # genres_forward_nhwc (or the packed layout) directly: at this size the two relayout
    # transposes below cost about as much as the kernel itself.
    y = genres_forward_nhwc(jnp.transpose(x_nchw, (0, 2, 3, 1)), pk)
    return jnp.transpose(y, (0, 3, 1, 2))


# ------------------------------ pure-JAX f32 reference (NHWC) ------------------------------
def genres_ref_nhwc(x, p):
    def bn(t, g, b):
        m = jnp.mean(t, axis=(0, 1, 2), keepdims=True)
        v = jnp.mean((t - m) ** 2, axis=(0, 1, 2), keepdims=True)
        return (t - m) * lax.rsqrt(v + EPS) * g.reshape(1, 1, 1, -1) + b.reshape(1, 1, 1, -1)

    def prelu(t):
        return jnp.where(t >= 0, t, p["a"][0] * t)

    def conv(t, w, b):
        y = lax.conv_general_dilated(t, w, (1, 1), "SAME",
                                     dimension_numbers=("NHWC", "HWIO", "NHWC"),
                                     precision=lax.Precision.HIGHEST)
        return y + b.reshape(1, 1, 1, -1)

    h = conv(prelu(bn(x, p["g1"], p["be1"])), p["w1"], p["b1"])
    h = conv(prelu(bn(h, p["g2"], p["be2"])), p["w2"], p["b2"])
    return x + h


if __name__ == "__main__":
    N, C, H, W = 2, 8, 16, 16            # nf = 8  ->  W*C = 128 lanes exactly
    key = jax.random.PRNGKey(0)
    kx, kw1, kb1, kw2, kb2 = jax.random.split(key, 5)

    x_nchw = jax.random.normal(kx, (N, C, H, W), jnp.float32)

    raw = dict(
        w1=0.1 * jax.random.normal(kw1, (3, 3, C, C), jnp.float32),   # HWIO
        b1=0.05 * jax.random.normal(kb1, (C,), jnp.float32),
        w2=0.1 * jax.random.normal(kw2, (3, 3, C, C), jnp.float32),
        b2=0.05 * jax.random.normal(kb2, (C,), jnp.float32),
        g1=jnp.ones((C,), jnp.float32), be1=jnp.zeros((C,), jnp.float32),   # BN defaults
        g2=jnp.ones((C,), jnp.float32), be2=jnp.zeros((C,), jnp.float32),
        a=jnp.full((1,), 0.25, jnp.float32),                                # PReLU default
    )
    packed = pack_genres_params(raw, W, C)

    x_nhwc = jnp.transpose(x_nchw, (0, 2, 3, 1))
    out_nhwc = jax.block_until_ready(genres_forward_nhwc(x_nhwc, packed))
    out_nchw = jax.block_until_ready(genres_forward_nchw(x_nchw, packed))

    ref_nhwc = genres_ref_nhwc(x_nhwc, raw)

    # Tolerance: with CONV_DTYPE = bf16 the conv matmul operands are rounded to bf16
    # (f32 accumulation), which can deviate from the pure-f32 reference by up to ~1e-2
    # at these value scales.  Set CONV_DTYPE = jnp.float32 above for ~1e-6 agreement.
    tol = 2e-2 if CONV_DTYPE == jnp.bfloat16 else 2e-3
    np.testing.assert_allclose(np.asarray(out_nhwc), np.asarray(ref_nhwc),
                               rtol=tol, atol=tol)
    np.testing.assert_allclose(np.asarray(out_nchw),
                               np.asarray(jnp.transpose(ref_nhwc, (0, 3, 1, 2))),
                               rtol=tol, atol=tol)
    print("KERNEL_OK")
</pallas_src>

<mosaic_0001>
module attributes {stable_mosaic.version = 11 : i64} {
  func.func @kernel(%arg0: memref<32x128xf32, #tpu.memory_space<vmem>>, %arg1: memref<128x128xf32, #tpu.memory_space<vmem>>, %arg2: memref<1x128xf32, #tpu.memory_space<vmem>>, %arg3: memref<1x128xf32, #tpu.memory_space<vmem>>, %arg4: memref<384x128xbf16, #tpu.memory_space<vmem>>, %arg5: memref<1x128xf32, #tpu.memory_space<vmem>>, %arg6: memref<1x128xf32, #tpu.memory_space<vmem>>, %arg7: memref<1x128xf32, #tpu.memory_space<vmem>>, %arg8: memref<384x128xbf16, #tpu.memory_space<vmem>>, %arg9: memref<1x128xf32, #tpu.memory_space<vmem>>, %arg10: memref<1xf32, #tpu.memory_space<smem>>, %arg11: memref<32x128xf32, #tpu.memory_space<vmem>>) attributes {dimension_semantics = [], scalar_prefetch = 0 : i64, scratch_operands = 0 : i64, tpu.core_type = #tpu.core_type<tc>} {
    %c0 = arith.constant 0 : index
    %c0_0 = arith.constant 0 : index
    %0 = vector.load %arg0[%c0, %c0_0] : memref<32x128xf32, #tpu.memory_space<vmem>>, vector<32x128xf32>
    %c0_1 = arith.constant 0 : index
    %c0_2 = arith.constant 0 : index
    %1 = vector.load %arg1[%c0_1, %c0_2] : memref<128x128xf32, #tpu.memory_space<vmem>>, vector<128x128xf32>
    %c0_3 = arith.constant 0 : index
    %2 = memref.load %arg10[%c0_3] : memref<1xf32, #tpu.memory_space<smem>>
    %3 = tpu.iota {dimensions = array<i32: 0>} : vector<32x128xi32>
    %c16_i32 = arith.constant 16 : i32
    %c0_i32 = arith.constant 0 : i32
    %4 = arith.cmpi eq, %c16_i32, %c0_i32 : i32
    %c1_i32 = arith.constant 1 : i32
    %5 = arith.select %4, %c1_i32, %c16_i32 : i32
    %6 = vector.broadcast %5 : i32 to vector<32x128xi32>
    %7 = arith.remsi %3, %6 : vector<32x128xi32>
    %c0_i32_4 = arith.constant 0 : i32
    %8 = vector.broadcast %c0_i32_4 : i32 to vector<32x128xi32>
    %9 = arith.cmpi ne, %7, %8 : vector<32x128xi32>
    %c0_i32_5 = arith.constant 0 : i32
    %10 = vector.broadcast %c0_i32_5 : i32 to vector<32x128xi32>
    %11 = arith.cmpi slt, %7, %10 : vector<32x128xi32>
    %c0_i32_6 = arith.constant 0 : i32
    %12 = arith.cmpi slt, %5, %c0_i32_6 : i32
    %13 = vector.broadcast %12 : i1 to vector<32x128xi1>
    %14 = vector.broadcast %13 : vector<32x128xi1> to vector<32x128xi1>
    %15 = arith.xori %11, %14 : vector<32x128xi1>
    %16 = arith.andi %15, %9 : vector<32x128xi1>
    %17 = vector.broadcast %5 : i32 to vector<32x128xi32>
    %18 = arith.addi %7, %17 : vector<32x128xi32>
    %19 = arith.select %16, %18, %7 : vector<32x128xi1>, vector<32x128xi32>
    %c0_i32_7 = arith.constant 0 : i32
    %20 = vector.broadcast %c0_i32_7 : i32 to vector<32x128xi32>
    %21 = arith.cmpi eq, %19, %20 : vector<32x128xi32>
    %c15_i32 = arith.constant 15 : i32
    %22 = vector.broadcast %c15_i32 : i32 to vector<32x128xi32>
    %23 = arith.cmpi eq, %19, %22 : vector<32x128xi32>
    %cst = arith.constant 0.000000e+00 : f32
    %24 = vector.broadcast %cst : f32 to vector<1x128xf32>
    %c0_8 = arith.constant 0 : index
    %c0_9 = arith.constant 0 : index
    %25 = vector.load %arg2[%c0_8, %c0_9] : memref<1x128xf32, #tpu.memory_space<vmem>>, vector<1x128xf32>
    %c0_10 = arith.constant 0 : index
    %c0_11 = arith.constant 0 : index
    %26 = vector.load %arg3[%c0_10, %c0_11] : memref<1x128xf32, #tpu.memory_space<vmem>>, vector<1x128xf32>
    %cst_12 = arith.constant dense<0.000000e+00> : vector<128xf32>
    %27 = vector.multi_reduction <add>, %0, %cst_12 [0] : vector<32x128xf32> to vector<128xf32>
    %28 = vector.shape_cast %27 : vector<128xf32> to vector<1x128xf32>
    %29 = arith.mulf %0, %0 : vector<32x128xf32>
    %cst_13 = arith.constant dense<0.000000e+00> : vector<128xf32>
    %30 = vector.multi_reduction <add>, %29, %cst_13 [0] : vector<32x128xf32> to vector<128xf32>
    %31 = vector.shape_cast %30 : vector<128xf32> to vector<1x128xf32>
    %32 = tpu.concatenate %28, %31 in 0 : vector<1x128xf32>, vector<1x128xf32> -> vector<2x128xf32>
    %cst_14 = arith.constant dense<0.000000e+00> : vector<2x128xf32>
    %33 = tpu.matmul %32, %1, %cst_14 {dimension_numbers = #tpu.dot_dimension_numbers<[1], [0], [0], [1], [0, 0, 1, 1], [], []>, precision = #tpu.contract_precision<fp32>} : vector<2x128xf32>, vector<128x128xf32>, vector<2x128xf32> -> vector<2x128xf32>
    %cst_15 = arith.constant 0.001953125 : f32
    %34 = vector.broadcast %cst_15 : f32 to vector<2x128xf32>
    %35 = arith.mulf %33, %34 : vector<2x128xf32>
    %36 = vector.extract_strided_slice %35 {offsets = [0, 0], sizes = [1, 128], strides = [1, 1]} : vector<2x128xf32> to vector<1x128xf32>
    %37 = vector.extract_strided_slice %35 {offsets = [1, 0], sizes = [1, 128], strides = [1, 1]} : vector<2x128xf32> to vector<1x128xf32>
    %38 = arith.mulf %36, %36 : vector<1x128xf32>
    %39 = arith.subf %37, %38 : vector<1x128xf32>
    %cst_16 = arith.constant 9.99999974E-6 : f32
    %40 = vector.broadcast %cst_16 : f32 to vector<1x128xf32>
    %41 = arith.addf %39, %40 : vector<1x128xf32>
    %42 = math.rsqrt %41 : vector<1x128xf32>
    %43 = arith.mulf %25, %42 : vector<1x128xf32>
    %44 = arith.mulf %36, %43 : vector<1x128xf32>
    %45 = arith.subf %26, %44 : vector<1x128xf32>
    %46 = vector.broadcast %43 : vector<1x128xf32> to vector<32x128xf32>
    %47 = arith.mulf %0, %46 : vector<32x128xf32>
    %48 = vector.broadcast %45 : vector<1x128xf32> to vector<32x128xf32>
    %49 = arith.addf %47, %48 : vector<32x128xf32>
    %cst_17 = arith.constant 0.000000e+00 : f32
    %50 = vector.broadcast %cst_17 : f32 to vector<32x128xf32>
    %51 = arith.cmpf oge, %49, %50 : vector<32x128xf32>
    %52 = vector.broadcast %2 : f32 to vector<32x128xf32>
    %53 = arith.mulf %52, %49 : vector<32x128xf32>
    %54 = arith.select %51, %49, %53 : vector<32x128xi1>, vector<32x128xf32>
    %c0_18 = arith.constant 0 : index
    %c0_19 = arith.constant 0 : index
    %55 = vector.load %arg4[%c0_18, %c0_19] : memref<384x128xbf16, #tpu.memory_space<vmem>>, vector<384x128xbf16>
    %c0_20 = arith.constant 0 : index
    %c0_21 = arith.constant 0 : index
    %56 = vector.load %arg5[%c0_20, %c0_21] : memref<1x128xf32, #tpu.memory_space<vmem>>, vector<1x128xf32>
    %57 = vector.extract_strided_slice %54 {offsets = [0, 0], sizes = [31, 128], strides = [1, 1]} : vector<32x128xf32> to vector<31x128xf32>
    %58 = tpu.concatenate %24, %57 in 0 : vector<1x128xf32>, vector<31x128xf32> -> vector<32x128xf32>
    %59 = vector.extract_strided_slice %54 {offsets = [1, 0], sizes = [31, 128], strides = [1, 1]} : vector<32x128xf32> to vector<31x128xf32>
    %60 = tpu.concatenate %59, %24 in 0 : vector<31x128xf32>, vector<1x128xf32> -> vector<32x128xf32>
    %cst_22 = arith.constant 0.000000e+00 : f32
    %61 = vector.broadcast %cst_22 : f32 to vector<32x128xf32>
    %62 = arith.select %21, %61, %58 : vector<32x128xi1>, vector<32x128xf32>
    %cst_23 = arith.constant 0.000000e+00 : f32
    %63 = vector.broadcast %cst_23 : f32 to vector<32x128xf32>
    %64 = arith.select %23, %63, %60 : vector<32x128xi1>, vector<32x128xf32>
    %65 = arith.truncf %62 : vector<32x128xf32> to vector<32x128xbf16>
    %66 = arith.truncf %54 : vector<32x128xf32> to vector<32x128xbf16>
    %67 = arith.truncf %64 : vector<32x128xf32> to vector<32x128xbf16>
    %68 = tpu.concatenate %65, %66, %67 in 1 : vector<32x128xbf16>, vector<32x128xbf16>, vector<32x128xbf16> -> vector<32x384xbf16>
    %cst_24 = arith.constant dense<0.000000e+00> : vector<32x128xf32>
    %69 = tpu.matmul %68, %55, %cst_24 {dimension_numbers = #tpu.dot_dimension_numbers<[1], [0], [0], [1], [0, 0, 1, 1], [], []>} : vector<32x384xbf16>, vector<384x128xbf16>, vector<32x128xf32> -> vector<32x128xf32>
    %70 = vector.broadcast %56 : vector<1x128xf32> to vector<32x128xf32>
    %71 = arith.addf %69, %70 : vector<32x128xf32>
    %c0_25 = arith.constant 0 : index
    %c0_26 = arith.constant 0 : index
    %72 = vector.load %arg6[%c0_25, %c0_26] : memref<1x128xf32, #tpu.memory_space<vmem>>, vector<1x128xf32>
    %c0_27 = arith.constant 0 : index
    %c0_28 = arith.constant 0 : index
    %73 = vector.load %arg7[%c0_27, %c0_28] : memref<1x128xf32, #tpu.memory_space<vmem>>, vector<1x128xf32>
    %cst_29 = arith.constant dense<0.000000e+00> : vector<128xf32>
    %74 = vector.multi_reduction <add>, %71, %cst_29 [0] : vector<32x128xf32> to vector<128xf32>
    %75 = vector.shape_cast %74 : vector<128xf32> to vector<1x128xf32>
    %76 = arith.mulf %71, %71 : vector<32x128xf32>
    %cst_30 = arith.constant dense<0.000000e+00> : vector<128xf32>
    %77 = vector.multi_reduction <add>, %76, %cst_30 [0] : vector<32x128xf32> to vector<128xf32>
    %78 = vector.shape_cast %77 : vector<128xf32> to vector<1x128xf32>
    %79 = tpu.concatenate %75, %78 in 0 : vector<1x128xf32>, vector<1x128xf32> -> vector<2x128xf32>
    %cst_31 = arith.constant dense<0.000000e+00> : vector<2x128xf32>
    %80 = tpu.matmul %79, %1, %cst_31 {dimension_numbers = #tpu.dot_dimension_numbers<[1], [0], [0], [1], [0, 0, 1, 1], [], []>, precision = #tpu.contract_precision<fp32>} : vector<2x128xf32>, vector<128x128xf32>, vector<2x128xf32> -> vector<2x128xf32>
    %cst_32 = arith.constant 0.001953125 : f32
    %81 = vector.broadcast %cst_32 : f32 to vector<2x128xf32>
    %82 = arith.mulf %80, %81 : vector<2x128xf32>
    %83 = vector.extract_strided_slice %82 {offsets = [0, 0], sizes = [1, 128], strides = [1, 1]} : vector<2x128xf32> to vector<1x128xf32>
    %84 = vector.extract_strided_slice %82 {offsets = [1, 0], sizes = [1, 128], strides = [1, 1]} : vector<2x128xf32> to vector<1x128xf32>
    %85 = arith.mulf %83, %83 : vector<1x128xf32>
    %86 = arith.subf %84, %85 : vector<1x128xf32>
    %cst_33 = arith.constant 9.99999974E-6 : f32
    %87 = vector.broadcast %cst_33 : f32 to vector<1x128xf32>
    %88 = arith.addf %86, %87 : vector<1x128xf32>
    %89 = math.rsqrt %88 : vector<1x128xf32>
    %90 = arith.mulf %72, %89 : vector<1x128xf32>
    %91 = arith.mulf %83, %90 : vector<1x128xf32>
    %92 = arith.subf %73, %91 : vector<1x128xf32>
    %93 = vector.broadcast %90 : vector<1x128xf32> to vector<32x128xf32>
    %94 = arith.mulf %71, %93 : vector<32x128xf32>
    %95 = vector.broadcast %92 : vector<1x128xf32> to vector<32x128xf32>
    %96 = arith.addf %94, %95 : vector<32x128xf32>
    %cst_34 = arith.constant 0.000000e+00 : f32
    %97 = vector.broadcast %cst_34 : f32 to vector<32x128xf32>
    %98 = arith.cmpf oge, %96, %97 : vector<32x128xf32>
    %99 = vector.broadcast %2 : f32 to vector<32x128xf32>
    %100 = arith.mulf %99, %96 : vector<32x128xf32>
    %101 = arith.select %98, %96, %100 : vector<32x128xi1>, vector<32x128xf32>
    %c0_35 = arith.constant 0 : index
    %c0_36 = arith.constant 0 : index
    %102 = vector.load %arg8[%c0_35, %c0_36] : memref<384x128xbf16, #tpu.memory_space<vmem>>, vector<384x128xbf16>
    %c0_37 = arith.constant 0 : index
    %c0_38 = arith.constant 0 : index
    %103 = vector.load %arg9[%c0_37, %c0_38] : memref<1x128xf32, #tpu.memory_space<vmem>>, vector<1x128xf32>
    %104 = vector.extract_strided_slice %101 {offsets = [0, 0], sizes = [31, 128], strides = [1, 1]} : vector<32x128xf32> to vector<31x128xf32>
    %105 = tpu.concatenate %24, %104 in 0 : vector<1x128xf32>, vector<31x128xf32> -> vector<32x128xf32>
    %106 = vector.extract_strided_slice %101 {offsets = [1, 0], sizes = [31, 128], strides = [1, 1]} : vector<32x128xf32> to vector<31x128xf32>
    %107 = tpu.concatenate %106, %24 in 0 : vector<31x128xf32>, vector<1x128xf32> -> vector<32x128xf32>
    %cst_39 = arith.constant 0.000000e+00 : f32
    %108 = vector.broadcast %cst_39 : f32 to vector<32x128xf32>
    %109 = arith.select %21, %108, %105 : vector<32x128xi1>, vector<32x128xf32>
    %cst_40 = arith.constant 0.000000e+00 : f32
    %110 = vector.broadcast %cst_40 : f32 to vector<32x128xf32>
    %111 = arith.select %23, %110, %107 : vector<32x128xi1>, vector<32x128xf32>
    %112 = arith.truncf %109 : vector<32x128xf32> to vector<32x128xbf16>
    %113 = arith.truncf %101 : vector<32x128xf32> to vector<32x128xbf16>
    %114 = arith.truncf %111 : vector<32x128xf32> to vector<32x128xbf16>
    %115 = tpu.concatenate %112, %113, %114 in 1 : vector<32x128xbf16>, vector<32x128xbf16>, vector<32x128xbf16> -> vector<32x384xbf16>
    %cst_41 = arith.constant dense<0.000000e+00> : vector<32x128xf32>
    %116 = tpu.matmul %115, %102, %cst_41 {dimension_numbers = #tpu.dot_dimension_numbers<[1], [0], [0], [1], [0, 0, 1, 1], [], []>} : vector<32x384xbf16>, vector<384x128xbf16>, vector<32x128xf32> -> vector<32x128xf32>
    %117 = vector.broadcast %103 : vector<1x128xf32> to vector<32x128xf32>
    %118 = arith.addf %116, %117 : vector<32x128xf32>
    %119 = arith.addf %0, %118 : vector<32x128xf32>
    %c0_42 = arith.constant 0 : index
    %c0_43 = arith.constant 0 : index
    %120 = vector.load %arg11[%c0_42, %c0_43] : memref<32x128xf32, #tpu.memory_space<vmem>>, vector<32x128xf32>
    tpu.vector_store %arg11[%c0_42, %c0_43], %119 {strides = array<i32>} : memref<32x128xf32, #tpu.memory_space<vmem>>, vector<32x128xf32>,
    return
  }
}

</mosaic_0001>

<bundles_post_ra>
// kernel: tpu_custom_call.1
= control target key start
LH: loop header
LB: loop body
LE: loop exit
PB: predicated region body
PF: predicated region fallthrough
CT: control target
= control target key end

     0   :  { %17 = vsyncpa [#allocation4], 0  ;;  %s4231_s0 = inlined_call_operand.hbm [shape: f32[32,128], index: 0, kind: input, shape index: {}]   ;;  %s4232_s1 = inlined_call_operand.hbm [shape: f32[128,128], index: 1, kind: input, shape index: {}]   ;;  %s4233_s2 = inlined_call_operand.vmem [shape: f32[1,128], index: 2, kind: input, shape index: {}]   ;;  %s4234_s3 = inlined_call_operand.vmem [shape: f32[1,128], index: 3, kind: input, shape index: {}]   ;;  %s4235_s4 = inlined_call_operand.hbm [shape: bf16[384,128], index: 4, kind: input, shape index: {}]   ;;  %s4236_s5 = inlined_call_operand.vmem [shape: f32[1,128], index: 5, kind: input, shape index: {}]   ;;  %s4237_s6 = inlined_call_operand.vmem [shape: f32[1,128], index: 6, kind: input, shape index: {}]   ;;  %s4238_s7 = inlined_call_operand.vmem [shape: f32[1,128], index: 7, kind: input, shape index: {}]   ;;  %s4239_s8 = inlined_call_operand.hbm [shape: bf16[384,128], index: 8, kind: input, shape index: {}]   ;;  %s4240_s9 = inlined_call_operand.vmem [shape: f32[1,128], index: 9, kind: input, shape index: {}]   ;;  %s4241_s10 = inlined_call_operand.<no memory space> [shape: f32[1], index: 10, kind: input, shape index: {}]   ;;  %s4242_s11 = inlined_call_operand.hbm [shape: f32[32,128], index: 11, kind: output, shape index: {}]  }
   0x1   :  { %18 = vsyncpa [#allocation7], 0 }
   0x2   :  { %19 = vsyncpa [#allocation10], 0 }
   0x3   :  { %20 = vsyncpa [#allocation5], 0  ;;  %s3341_s17 = smov [#allocation6]   ;;  %s3342_s19 = smov [#allocation3]  }
   0x4   :  { %s38_s18 = sshll.u32 %s3341_s17, 4  ;;  %s26_s20 = sshll.u32 %s3342_s19, 4  ;;  %s39_s18 = int_to_ptr.vmem [resolvable:$true] %s38_s18  ;;  %s27_s20 = int_to_ptr.vmem [resolvable:$true] %s26_s20 }
   0x5   :  { %s3241_s21 = scalar_lea.vmem %s39_s18, 2048  ;;  %p3246_p1 = scmp.lt.s32.totalorder %s39_s18, %s39_s18 }
   0x6   :  { %p3242_p0 = scmp.ne.s32.totalorder %s39_s18, %s3241_s21  ;;  %p3247_p2 = scmp.lt.s32.totalorder %s3241_s21, %s3241_s21 }
   0x8   :  { %p3248_p3 = por %p3247_p2, %p3246_p1 }
   0xa   :  { %p3249_p4 = pnand %p3248_p3, %p3242_p0 }
   0xc   :  { %3252 = shalt.err (!%p3249_p4)
}
   0xd   :  { %s3343_s22 = smov 128   ;;  %s3344_s23 = smov 8  }
   0xe   :  { %44 = dma.hbm_to_vmem [thread:$0]  %s4232_s1, 2048, %s39_s18, [#allocation7], %s3343_s22, %s3343_s22, %s3344_s23  }
   0xf   :  { %s3261_s26 = scalar_lea.vmem %s27_s20, 512  ;;  %p3266_p6 = scmp.lt.s32.totalorder %s27_s20, %s27_s20 }
  0x10   :  { %p3262_p5 = scmp.ne.s32.totalorder %s27_s20, %s3261_s26  ;;  %p3267_p7 = scmp.lt.s32.totalorder %s3261_s26, %s3261_s26 }
  0x12   :  { %p3268_p8 = por %p3267_p7, %p3266_p6 }
  0x14   :  { %p3269_p9 = pnand %p3268_p8, %p3262_p5 }
  0x16   :  { %3272 = shalt.err (!%p3269_p9)
}
  0x17   :  { %32 = dma.hbm_to_vmem [thread:$0]  %s4231_s0, 512, %s27_s20, [#allocation4], %s3343_s22, %s3343_s22, %s3344_s23  }
  0x18   :  { %s3345_s29 = smov [#allocation8]  }
  0x19   :  { %s54_s30 = sshll.u32 %s3345_s29, 4  ;;  %s55_s30 = int_to_ptr.vmem [resolvable:$true] %s54_s30 }
  0x1a   :  { %s3281_s12 = scalar_lea.vmem %s55_s30, 3072  ;;  %p3286_p11 = scmp.lt.s32.totalorder %s55_s30, %s55_s30 }
  0x1b   :  { %p3282_p10 = scmp.ne.s32.totalorder %s55_s30, %s3281_s12  ;;  %p3287_p12 = scmp.lt.s32.totalorder %s3281_s12, %s3281_s12 }
  0x1d   :  { %p3288_p13 = por %p3287_p12, %p3286_p11 }
  0x1f   :  { %p3289_p0 = pnand %p3288_p13, %p3282_p10 }
  0x21   :  { %3292 = shalt.err (!%p3289_p0)
}
  0x22   :  { %s3346_s1 = smov 64   ;;  %s3347_s13 = smov 4  }
  0x23   :  { %60 = dma.hbm_to_vmem [thread:$0]  %s4235_s4, 3072, %s55_s30, [#allocation7], %s3346_s1, %s3346_s1, %s3347_s13  }
  0x24   :  { %s3348_s16 = smov [#allocation9]  }
  0x25   :  { %s72_s17 = sshll.u32 %s3348_s16, 4  ;;  %s73_s17 = int_to_ptr.vmem [resolvable:$true] %s72_s17 }
  0x26   :  { %s3301_s0 = scalar_lea.vmem %s73_s17, 3072  ;;  %p3306_p2 = scmp.lt.s32.totalorder %s73_s17, %s73_s17 }
  0x27   :  { %p3302_p1 = scmp.ne.s32.totalorder %s73_s17, %s3301_s0  ;;  %p3307_p3 = scmp.lt.s32.totalorder %s3301_s0, %s3301_s0 }
  0x29   :  { %p3308_p4 = por %p3307_p3, %p3306_p2 }
  0x2b   :  { %p3309_p5 = pnand %p3308_p4, %p3302_p1 }
  0x2d   :  { %3312 = shalt.err (!%p3309_p5)
}
  0x2e   :  { %78 = dma.hbm_to_vmem [thread:$0]  %s4239_s8, 3072, %s73_s17, [#allocation10], %s3346_s1, %s3346_s1, %s3347_s13  }
  0x2f   :  { %3333 = dma.done.wait [#allocation4], 512  }
  0x30   :  { %3334 = vsyncadd [#allocation4], 4294966784 }
  0x31   :  { %3335 = dma.done.wait [#allocation7], 5120  }
  0x32   :  { %3336 = vsyncadd [#allocation7], 4294962176 }
  0x33   :  { %3337 = dma.done.wait [#allocation10], 3072  }
  0x34   :  { %3338 = vsyncadd [#allocation10], 4294964224  ;;  %v4247_v0 = vmov 0.0   ;;  %vm3350_vm0 = vmmov 0   ;;  %v115_v1 = vld [vmem:[#allocation6 + $0x78] sm:$0xff]  ;;  %v114_v2 = vld [vmem:[#allocation6 + $0x70] sm:$0xff] }
  0x35   :  { %2704 = vmatprep.subr.mxu0 %v4247_v0  ;;  %2739 = vmatprep.subr.mxu1 %v4247_v0  ;;  %v113_v3 = vld [vmem:[#allocation6 + $0x68] sm:$0xff]  ;;  %v3438_v4 = vand.u32 4294901760, %v115_v1  ;;  %v3440_v5 = vand.u32 4294901760, %v114_v2  ;;  %v112_v7 = vld [vmem:[#allocation6 + $0x60] sm:$0xff]  ;;  %v111_v8 = vld [vmem:[#allocation6 + $0x58] sm:$0xff]  ;;  %vm202_vm1 = vcmask 1040384  }
  0x36   :  { %2736 = vmatprep.mubr.msk.f32.mxu0 %vm3350_vm0, %v4247_v0  ;;  %2771 = vmatprep.mubr.msk.f32.mxu1 %vm3350_vm0, %v4247_v0  ;;  %v3442_v6 = vand.u32 4294901760, %v113_v3  ;;  %v110_v9 = vld [vmem:[#allocation6 + $0x50] sm:$0xff]  ;;  %v3444_v10 = vand.u32 4294901760, %v112_v7  ;;  %v3446_v11 = vand.u32 4294901760, %v111_v8  ;;  %v109_v13 = vld [vmem:[#allocation6 + $0x48] sm:$0xff]  ;;  %v108_v14 = vld [vmem:[#allocation6 + $0x40] sm:$0xff] }
  0x37   :  { %v3448_v12 = vand.u32 4294901760, %v110_v9  ;;  %2705 = vmatpush3.msra.mxu0 %v3438_v4  ;;  %v3452_v15 = vsub.f32 %v115_v1, %v3438_v4  ;;  %v3455_v16 = vsub.f32 %v114_v2, %v3440_v5  ;;  %v3457_v17 = vand.u32 4294901760, %v109_v13  ;;  %v107_v19 = vld [vmem:[#allocation6 + $0x38] sm:$0xff]  ;;  %v106_v26 = vld [vmem:[#allocation6 + $0x30] sm:$0xff]  ;;  %v105_v31 = vld [vmem:[#allocation6 + $0x28] sm:$0xff] }
  0x38   :  { %v3460_v18 = vsub.f32 %v113_v3, %v3442_v6  ;;  %2706 = vmatprep.subr.mxu0 %v4247_v0  ;;  %v3464_v20 = vsub.f32 %v112_v7, %v3444_v10  ;;  %v3467_v21 = vsub.f32 %v111_v8, %v3446_v11  ;;  %v3479_v25 = vand.u32 4294901760, %v108_v14  ;;  %v104_v32 = vld [vmem:[#allocation6 + $0x20] sm:$0xff]  ;;  %v3513_v41 = vld [vmem:[#allocation6 + $0x18] sm:$0xff]  ;;  %v102_v46 = vld [vmem:[#allocation6 + $0x10] sm:$0xff] }
  0x39   :  { %2707 = vmatpush3.msra.mxu0 %v3440_v5  ;;  %v3471_v22 = vand.u32 4294901760, %v3452_v15  ;;  %v3474_v23 = vand.u32 4294901760, %v3455_v16  ;;  %v3485_v28 = vand.u32 4294901760, %v107_v19  ;;  %v3491_v30 = vsub.f32 %v110_v9, %v3448_v12  ;;  %v101_v50 = vld [vmem:[#allocation6 + $0x8] sm:$0xff]  ;;  %v3540_v53 = vld [vmem:[#allocation3] sm:$0xff]  ;;  %v3569_v1 = vld [vmem:[#allocation3 + $0x10] sm:$0xff] }
  0x3a   :  { %v3477_v24 = vand.u32 4294901760, %v3460_v18  ;;  %2708 = vmatprep.subr.mxu0 %v4247_v0  ;;  %v3483_v27 = vand.u32 4294901760, %v3464_v20  ;;  %v3488_v29 = vand.u32 4294901760, %v3467_v21  ;;  %v3501_v36 = vsub.f32 %v109_v13, %v3457_v17  ;;  %4294 = vst [vmem:[#allocation26_spill] sm:$0xff] %v3540_v53  ;;  %v3554_v58 = vld [vmem:[#allocation3 + $0x8] sm:$0xff]  ;;  %v100_v63 = vld [vmem:[#allocation6] sm:$0xff] }
  0x3b   :  { %4284 = vst [vmem:[#allocation16_spill] sm:$0xff] %v3471_v22  ;;  %4285 = vst [vmem:[#allocation17_spill] sm:$0xff] %v3474_v23  ;;  %2709 = vmatpush3.msra.mxu0 %v3442_v6  ;;  %v299_v33 = vsub.f32 %v3452_v15, %v3471_v22  ;;  %v306_v34 = vsub.f32 %v3455_v16, %v3474_v23  ;;  %v3508_v39 = vand.u32 4294901760, %v106_v26  ;;  %v3511_v40 = vand.u32 4294901760, %v3491_v30 }
  0x3c   :  { %4286 = vst [vmem:[#allocation18_spill] sm:$0xff] %v3477_v24  ;;  %4287 = vst [vmem:[#allocation19_spill] sm:$0xff] %v3483_v27  ;;  %v313_v35 = vsub.f32 %v3460_v18, %v3477_v24  ;;  %2710 = vmatprep.subr.mxu0 %v4247_v0  ;;  %v320_v37 = vsub.f32 %v3464_v20, %v3483_v27  ;;  %v327_v38 = vsub.f32 %v3467_v21, %v3488_v29  ;;  %vm971_vm3 = vcmask 1046528  }
  0x3d   :  { %4288 = vst [vmem:[#allocation20_spill] sm:$0xff] %v3488_v29  ;;  %4289 = vst [vmem:[#allocation21_spill] sm:$0xff] %v3511_v40  ;;  %2711 = vmatpush3.msra.mxu0 %v3444_v10  ;;  %v3516_v42 = vand.u32 4294901760, %v299_v33  ;;  %v3518_v43 = vand.u32 4294901760, %v306_v34  ;;  %v3520_v44 = vand.u32 4294901760, %v105_v31  ;;  %v3523_v45 = vand.u32 4294901760, %v3501_v36 }
  0x3e   :  { %2712 = vmatprep.subr.mxu0 %v4247_v0  ;;  %v334_v47 = vsub.f32 %v3491_v30, %v3511_v40  ;;  %v3528_v48 = vand.u32 4294901760, %v104_v32  ;;  %v3531_v49 = vsub.f32 %v108_v14, %v3479_v25  ;;  %v3535_v51 = vand.u32 4294901760, %v313_v35  ;;  %4298 = vst [vmem:[#allocation30_spill] sm:$0xff] %v3554_v58  ;;  %4300 = vst [vmem:[#allocation32_spill] sm:$0xff] %v3569_v1  ;;  %v3588_v14 = vld [vmem:[#allocation3 + $0x18] sm:$0xff] }
  0x3f   :  { %4290 = vst [vmem:[#allocation22_spill] sm:$0xff] %v3516_v42  ;;  %4291 = vst [vmem:[#allocation23_spill] sm:$0xff] %v3518_v43  ;;  %2713 = vmatpush3.msra.mxu0 %v3446_v11  ;;  %2740 = vmatpush3.msra.mxu1 %v3516_v42  ;;  %v3538_v52 = vsub.f32 %v107_v19, %v3485_v28  ;;  %v3544_v54 = vand.u32 4294901760, %v320_v37  ;;  %v3546_v55 = vand.u32 4294901760, %v327_v38  ;;  %v3561_v60 = vand.u32 4294901760, %v3513_v41 }
  0x40   :  { %4292 = vst [vmem:[#allocation24_spill] sm:$0xff] %v3523_v45  ;;  %4293 = vst [vmem:[#allocation25_spill] sm:$0xff] %v3535_v51  ;;  %2714 = vmatprep.subr.mxu0 %v4247_v0  ;;  %2741 = vmatprep.subr.mxu1 %v4247_v0  ;;  %v3549_v56 = vand.u32 4294901760, %v3531_v49  ;;  %v3552_v57 = vsub.f32 %v106_v26, %v3508_v39  ;;  %v341_v59 = vsub.f32 %v3501_v36, %v3523_v45  ;;  %vm3352_vm10 = vmmov 1  }
  0x41   :  { %4295 = vst [vmem:[#allocation27_spill] sm:$0xff] %v3544_v54  ;;  %4296 = vst [vmem:[#allocation28_spill] sm:$0xff] %v3546_v55  ;;  %2715 = vmatpush3.msra.mxu0 %v3448_v12  ;;  %2742 = vmatpush3.msra.mxu1 %v3518_v43  ;;  %v3564_v61 = vand.u32 4294901760, %v3538_v52  ;;  %v3567_v62 = vsub.f32 %v105_v31, %v3520_v44  ;;  %v3573_v2 = vand.u32 4294901760, %v334_v47  ;;  %v3575_v3 = vand.u32 4294901760, %v102_v46 }
  0x42   :  { %4297 = vst [vmem:[#allocation29_spill] sm:$0xff] %v3549_v56  ;;  %2716 = vmatprep.subr.mxu0 %v4247_v0  ;;  %2743 = vmatprep.subr.mxu1 %v4247_v0  ;;  %v3578_v7 = vsub.f32 %v104_v32, %v3528_v48  ;;  %v180_v8 = vadd.f32 %v3554_v58, %v3540_v53  ;;  %v3586_v13 = vand.u32 4294901760, %v101_v50  ;;  %4302 = vst [vmem:[#allocation34_spill] sm:$0xff] %v3588_v14 }
  0x43   :  { %4299 = vst [vmem:[#allocation31_spill] sm:$0xff] %v3564_v61  ;;  %4301 = vst [vmem:[#allocation33_spill] sm:$0xff] %v3573_v2  ;;  %2717 = vmatpush3.msra.mxu0 %v3457_v17  ;;  %2744 = vmatpush3.msra.mxu1 %v3535_v51  ;;  %v348_v9 = vsub.f32 %v3531_v49, %v3549_v56  ;;  %v189_v19 = vmul.f32 %v3540_v53, %v3540_v53  ;;  %v3597_v31 = vand.u32 4294901760, %v3552_v57 }
  0x44   :  { %v190_v26 = vmul.f32 %v3554_v58, %v3554_v58  ;;  %2718 = vmatprep.subr.mxu0 %v4247_v0  ;;  %2745 = vmatprep.subr.mxu1 %v4247_v0  ;;  %v3600_v32 = vand.u32 4294901760, %v3567_v62  ;;  %v181_v33 = vadd.f32 %v180_v8, %v3569_v1  ;;  %v355_v34 = vsub.f32 %v3538_v52, %v3564_v61 }
  0x45   :  { %4303 = vst [vmem:[#allocation35_spill] sm:$0xff] %v3597_v31  ;;  %2719 = vmatpush3.msra.mxu0 %v3479_v25  ;;  %2746 = vmatpush3.msra.mxu1 %v3544_v54  ;;  %v3607_v35 = vand.u32 4294901760, %v100_v63  ;;  %v3610_v37 = vand.u32 4294901760, %v3578_v7  ;;  %v191_v38 = vmul.f32 %v3569_v1, %v3569_v1  ;;  %v3616_v47 = vand.u32 4294901760, %v341_v59 }
  0x46   :  { %4304 = vst [vmem:[#allocation36_spill] sm:$0xff] %v3600_v32  ;;  %2720 = vmatprep.subr.mxu0 %v4247_v0  ;;  %2747 = vmatprep.subr.mxu1 %v4247_v0  ;;  %v182_v8 = vadd.f32 %v181_v33, %v3588_v14  ;;  %v192_v54 = vmul.f32 %v3588_v14, %v3588_v14  ;;  %v3623_v43 = vand.u32 4294901760, %v348_v9  ;;  %v4309_v33 = vmov 0.0  }
  0x47   :  { %4305 = vst [vmem:[#allocation37_spill] sm:$0xff] %v3610_v37  ;;  %4306 = vst [vmem:[#allocation38_spill] sm:$0xff] %v3616_v47  ;;  %v193_v51 = vadd.f32 %v190_v26, %v189_v19  ;;  %2721 = vmatpush3.msra.mxu0 %v3485_v28  ;;  %2748 = vmatpush3.msra.mxu1 %v3546_v55  ;;  %v3627_v42 = vsub.f32 %v3513_v41, %v3561_v60 }
  0x48   :  { %v3630_v0 = vsub.f32 %v102_v46, %v3575_v3  ;;  %v3633_v59 = vsub.f32 %v101_v50, %v3586_v13  ;;  %2722 = vmatprep.subr.mxu0 %v4309_v33  ;;  %2749 = vmatprep.subr.mxu1 %v4309_v33  ;;  %v362_v19 = vsub.f32 %v3552_v57, %v3597_v31  ;;  %v183_v26 = vrot.slane %v182_v8, 4 }
  0x49   :  { %v369_v9 = vsub.f32 %v3567_v62, %v3600_v32  ;;  %v194_v55 = vadd.f32 %v193_v51, %v191_v38  ;;  %2723 = vmatpush3.msra.mxu0 %v3508_v39  ;;  %2750 = vmatpush3.msra.mxu1 %v3573_v2  ;;  %v376_v41 = vsub.f32 %v3578_v7, %v3610_v37  ;;  %v3646_v46 = vand.u32 4294901760, %v3627_v42 }
  0x4a   :  { %4307 = vst [vmem:[#allocation39_spill] sm:$0xff] %v3630_v0  ;;  %4308 = vst [vmem:[#allocation40_spill] sm:$0xff] %v3633_v59  ;;  %v3649_v50 = vand.u32 4294901760, %v3630_v0  ;;  %v3652_v14 = vsub.f32 %v100_v63, %v3607_v35  ;;  %2724 = vmatprep.subr.mxu0 %v4309_v33  ;;  %2751 = vmatprep.subr.mxu1 %v4309_v33  ;;  %v3656_v51 = vand.u32 4294901760, %v355_v34  ;;  %v3659_v58 = vand.u32 4294901760, %v3633_v59 }
  0x4b   :  { %4310 = vst [vmem:[#allocation41_spill] sm:$0xff] %v3646_v46  ;;  %v184_v38 = vadd.f32 %v183_v26, %v182_v8  ;;  %v195_v2 = vadd.f32 %v194_v55, %v192_v54  ;;  %2725 = vmatpush3.msra.mxu0 %v3520_v44  ;;  %2752 = vmatpush3.msra.mxu1 %v3616_v47  ;;  %v3671_v54 = vand.u32 4294901760, %v362_v19  ;;  %v3673_v55 = vand.u32 4294901760, %v369_v9 }
  0x4c   :  { %4311 = vst [vmem:[#allocation42_spill] sm:$0xff] %v3649_v50  ;;  %4312 = vst [vmem:[#allocation43_spill] sm:$0xff] %v3652_v14  ;;  %v383_v53 = vsub.f32 %v3627_v42, %v3646_v46  ;;  %v390_v63 = vsub.f32 %v3630_v0, %v3649_v50  ;;  %2726 = vmatprep.subr.mxu0 %v4309_v33  ;;  %2753 = vmatprep.subr.mxu1 %v4309_v33  ;;  %v3675_v26 = vand.u32 4294901760, %v376_v41 }
  0x4d   :  { %4313 = vst [vmem:[#allocation44_spill] sm:$0xff] %v3659_v58  ;;  %v185_v34 = vrot.slane %v184_v38, 2  ;;  %v196_v8 = vrot.slane %v195_v2, 4  ;;  %2727 = vmatpush3.msra.mxu0 %v3528_v48  ;;  %2754 = vmatpush3.msra.mxu1 %v3623_v43  ;;  %v3678_v47 = vand.u32 4294901760, %v3652_v14  ;;  %v397_v41 = vsub.f32 %v3633_v59, %v3659_v58 }
  0x4e   :  { %2728 = vmatprep.subr.mxu0 %v4309_v33  ;;  %2755 = vmatprep.subr.mxu1 %v4309_v33  ;;  %v3682_v46 = vand.u32 4294901760, %v383_v53  ;;  %v3684_v37 = vand.u32 4294901760, %v390_v63 }
  0x4f   :  { %4314 = vst [vmem:[#allocation45_spill] sm:$0xff] %v3678_v47  ;;  %v186_v1 = vadd.f32 %v185_v34, %v184_v38  ;;  %v197_v50 = vadd.f32 %v196_v8, %v195_v2  ;;  %2729 = vmatpush3.msra.mxu0 %v3561_v60  ;;  %2756 = vmatpush3.msra.mxu1 %v3656_v51  ;;  %v3700_v63 = vand.u32 4294901760, %v397_v41 }
  0x50   :  { %2730 = vmatprep.subr.mxu0 %v4309_v33  ;;  %2757 = vmatprep.subr.mxu1 %v4309_v33  ;;  %v404_v34 = vsub.f32 %v3652_v14, %v3678_v47 }
  0x51   :  { %v187_v19 = vrot.slane %v186_v1, 1  ;;  %v198_v9 = vrot.slane %v197_v50, 2  ;;  %2731 = vmatpush3.msra.mxu0 %v3575_v3  ;;  %2758 = vmatpush3.msra.mxu1 %v3671_v54 }
  0x52   :  { %2732 = vmatprep.subr.mxu0 %v4309_v33  ;;  %2759 = vmatprep.subr.mxu1 %v4309_v33 }
  0x53   :  { %v199_v53 = vadd.f32 %v198_v9, %v197_v50  ;;  %2733 = vmatpush3.msra.mxu0 %v3586_v13  ;;  %2760 = vmatpush3.msra.mxu1 %v3673_v55  ;;  %v188_v2 = vadd.f32 %v187_v19, %v186_v1  ;;  %v3714_v19 = vand.u32 4294901760, %v404_v34  ;;  %v4316_v34 = vld [vmem:[#allocation41_spill] sm:$0xff] }
  0x54   :  { %2734 = vmatprep.subr.mxu0 %v4309_v33  ;;  %2761 = vmatprep.subr.mxu1 %v4309_v33 }
  0x55   :  { %v200_v38 = vrot.slane %v199_v53, 1  ;;  %2735 = vmatpush3.msra.mxu0 %v3607_v35  ;;  %2762 = vmatpush3.msra.mxu1 %v3675_v26 }
  0x56   :  { %2763 = vmatprep.subr.mxu1 %v4309_v33  ;;  %2774 = vmatprep.subr.mxu0 %v4309_v33 }
  0x57   :  { %v201_v50 = vadd.f32 %v200_v38, %v199_v53  ;;  %2764 = vmatpush3.msra.mxu1 %v3682_v46  ;;  %v4315_v38 = vld [vmem:[#allocation37_spill] sm:$0xff] }
  0x58   :  { %2765 = vmatprep.subr.mxu1 %v4309_v33 }
  0x59   :  { %v203_v8 = vsel %vm202_vm1, %v188_v2, %v201_v50  ;;  %2766 = vmatpush3.msra.mxu1 %v3684_v37  ;;  %v4317_v50 = vld [vmem:[#allocation42_spill] sm:$0xff] }
  0x5a   :  { %v3711_v1 = vand.u32 4294901760, %v203_v8  ;;  %2767 = vmatprep.subr.mxu1 %v4309_v33 }
  0x5b   :  { %2768 = vmatpush3.msra.mxu1 %v3700_v63 }
  0x5c   :  { %v3718_v9 = vsub.f32 %v203_v8, %v3711_v1  ;;  %2769 = vmatprep.subr.mxu1 %v4309_v33  ;;  %v3177_v8 = vld [vmem:[#allocation8 + $0x78] sm:$0xff]  }
  0x5d   :  { %2770 = vmatpush3.msra.mxu1 %v3714_v19 }
  0x5e   :  { %v287_v41 = vand.u32 4294901760, %v3718_v9  ;;  %2772 = vmatmul.mubr.f32.vlgmr.msra.gmra.mxu1 %v3711_v1  ;;  %2809 = vmatprep.subr.mxu1 %v4309_v33 }
  0x5f   :  { %2810 = vmatpush3.msra.mxu1 %v3438_v4  ;;  %2841 = vmatprep.mubr.msk.f32.mxu1 %vm3350_vm0, %v4309_v33 }
  0x60   :  { %v288_v53 = vsub.f32 %v3718_v9, %v287_v41  ;;  %2811 = vmatprep.subr.mxu1 %v4309_v33 }
  0x61   :  { %2812 = vmatpush3.msra.mxu1 %v3440_v5 }
  0x62   :  { %v289_v2 = vand.u32 4294901760, %v288_v53  ;;  %2813 = vmatprep.subr.mxu1 %v4309_v33  ;;  %v3180_v53 = vld [vmem:[#allocation8 + $0x70] sm:$0xff]  }
  0x63   :  { %2814 = vmatpush3.msra.mxu1 %v3442_v6 }
  0x64   :  { %2737 = vmatmul.mubr.f32.vlgmr.msra.gmra.mxu0 %v289_v2  ;;  %2815 = vmatprep.subr.mxu1 %v4309_v33  ;;  %v3181_v2 = vld [vmem:[#allocation8 + $0x30] sm:$0xff]  }
  0x65   :  { %2775 = vmatpush3.msra.mxu0 %v3452_v15  ;;  %2816 = vmatpush3.msra.mxu1 %v3444_v10 }
  0x66   :  { %2776 = vmatprep.subr.mxu0 %v4309_v33  ;;  %2817 = vmatprep.subr.mxu1 %v4309_v33 }
  0x67   :  { %2777 = vmatpush3.msra.mxu0 %v3455_v16  ;;  %2818 = vmatpush3.msra.mxu1 %v3446_v11 }
  0x68   :  { %2778 = vmatprep.subr.mxu0 %v4309_v33  ;;  %2819 = vmatprep.subr.mxu1 %v4309_v33 }
  0x69   :  { %2779 = vmatpush3.msra.mxu0 %v3460_v18  ;;  %2820 = vmatpush3.msra.mxu1 %v3448_v12 }
  0x6a   :  { %2780 = vmatprep.subr.mxu0 %v4309_v33  ;;  %2821 = vmatprep.subr.mxu1 %v4309_v33 }
  0x6b   :  { %2781 = vmatpush3.msra.mxu0 %v3464_v20  ;;  %2822 = vmatpush3.msra.mxu1 %v3457_v17 }
  0x6c   :  { %2782 = vmatprep.subr.mxu0 %v4309_v33  ;;  %2823 = vmatprep.subr.mxu1 %v4309_v33 }
  0x6d   :  { %2783 = vmatpush3.msra.mxu0 %v3467_v21  ;;  %2824 = vmatpush3.msra.mxu1 %v3479_v25 }
  0x6e   :  { %2784 = vmatprep.subr.mxu0 %v4309_v33  ;;  %2825 = vmatprep.subr.mxu1 %v4309_v33 }
  0x6f   :  { %2785 = vmatpush3.msra.mxu0 %v3491_v30  ;;  %2826 = vmatpush3.msra.mxu1 %v3485_v28 }
  0x70   :  { %2786 = vmatprep.subr.mxu0 %v4309_v33  ;;  %2827 = vmatprep.subr.mxu1 %v4309_v33 }
  0x71   :  { %2787 = vmatpush3.msra.mxu0 %v3501_v36  ;;  %2828 = vmatpush3.msra.mxu1 %v3508_v39 }
  0x72   :  { %2788 = vmatprep.subr.mxu0 %v4309_v33  ;;  %2829 = vmatprep.subr.mxu1 %v4309_v33 }
  0x73   :  { %2789 = vmatpush3.msra.mxu0 %v3531_v49  ;;  %2830 = vmatpush3.msra.mxu1 %v3520_v44 }
  0x74   :  { %2790 = vmatprep.subr.mxu0 %v4309_v33  ;;  %2831 = vmatprep.subr.mxu1 %v4309_v33 }
  0x75   :  { %2791 = vmatpush3.msra.mxu0 %v3538_v52  ;;  %2806 = vmatprep.mubr.msk.f32.mxu0 %vm3350_vm0, %v4309_v33 }
  0x76   :  { %2792 = vmatprep.subr.mxu0 %v4309_v33  ;;  %2832 = vmatpush3.msra.mxu1 %v3528_v48 }
  0x77   :  { %2793 = vmatpush3.msra.mxu0 %v3552_v57  ;;  %2833 = vmatprep.subr.mxu1 %v4309_v33 }
  0x78   :  { %2794 = vmatprep.subr.mxu0 %v4309_v33  ;;  %2834 = vmatpush3.msra.mxu1 %v3561_v60 }
  0x79   :  { %2795 = vmatpush3.msra.mxu0 %v3567_v62  ;;  %2835 = vmatprep.subr.mxu1 %v4309_v33 }
  0x7a   :  { %2796 = vmatprep.subr.mxu0 %v4309_v33  ;;  %2836 = vmatpush3.msra.mxu1 %v3575_v3 }
  0x7b   :  { %2797 = vmatpush3.msra.mxu0 %v3578_v7  ;;  %2837 = vmatprep.subr.mxu1 %v4309_v33 }
  0x7c   :  { %2798 = vmatprep.subr.mxu0 %v4309_v33  ;;  %2838 = vmatpush3.msra.mxu1 %v3586_v13 }
  0x7d   :  { %2799 = vmatpush3.msra.mxu0 %v3627_v42  ;;  %2839 = vmatprep.subr.mxu1 %v4309_v33 }
  0x7e   :  { %2800 = vmatprep.subr.mxu0 %v4309_v33  ;;  %2840 = vmatpush3.msra.mxu1 %v3607_v35 }
  0x7f   :  { %2801 = vmatpush3.msra.mxu0 %v3630_v0  ;;  %2842 = vmatmul.mubr.f32.vlgmr.msra.gmra.mxu1 %v287_v41  ;;  %v3179_v41 = vld [vmem:[#allocation8 + $0xb8] sm:$0xff]  }
  0x80   :  { %2802 = vmatprep.subr.mxu0 %v4309_v33  ;;  %2879 = vmatprep.subr.mxu1 %v4309_v33 }
  0x81   :  { %2803 = vmatpush3.msra.mxu0 %v3633_v59  ;;  %2880 = vmatpush3.msra.mxu1 %v3438_v4 }
  0x82   :  { %2804 = vmatprep.subr.mxu0 %v4309_v33  ;;  %2881 = vmatprep.subr.mxu1 %v4309_v33 }
  0x83   :  { %2805 = vmatpush3.msra.mxu0 %v3652_v14  ;;  %2882 = vmatpush3.msra.mxu1 %v3440_v5 }
  0x84   :  { %2807 = vmatmul.mubr.f32.vlgmr.msra.gmra.mxu0 %v3718_v9  ;;  %2844 = vmatprep.subr.mxu0 %v4309_v33  ;;  %v3178_v9 = vld [vmem:[#allocation8 + $0x38] sm:$0xff]  }
  0x85   :  { %2845 = vmatpush3.msra.mxu0 %v3471_v22  ;;  %2883 = vmatprep.subr.mxu1 %v4309_v33  ;;  %v3351_v22 = vmov 1966171168  }
  0x86   :  { %2846 = vmatprep.subr.mxu0 %v4309_v33  ;;  %2884 = vmatpush3.msra.mxu1 %v3442_v6 }
  0x87   :  { %2847 = vmatpush3.msra.mxu0 %v3474_v23  ;;  %2885 = vmatprep.subr.mxu1 %v4309_v33 }
  0x88   :  { %2848 = vmatprep.subr.mxu0 %v4309_v33  ;;  %2886 = vmatpush3.msra.mxu1 %v3444_v10 }
  0x89   :  { %2849 = vmatpush3.msra.mxu0 %v3477_v24  ;;  %2887 = vmatprep.subr.mxu1 %v4309_v33 }
  0x8a   :  { %2850 = vmatprep.subr.mxu0 %v4309_v33  ;;  %2888 = vmatpush3.msra.mxu1 %v3446_v11 }
  0x8b   :  { %2851 = vmatpush3.msra.mxu0 %v3483_v27  ;;  %2889 = vmatprep.subr.mxu1 %v4309_v33 }
  0x8c   :  { %2852 = vmatprep.subr.mxu0 %v4309_v33  ;;  %2890 = vmatpush3.msra.mxu1 %v3448_v12 }
  0x8d   :  { %2853 = vmatpush3.msra.mxu0 %v3488_v29  ;;  %2891 = vmatprep.subr.mxu1 %v4309_v33 }
  0x8e   :  { %2854 = vmatprep.subr.mxu0 %v4309_v33  ;;  %2892 = vmatpush3.msra.mxu1 %v3457_v17 }
  0x8f   :  { %2855 = vmatpush3.msra.mxu0 %v3511_v40  ;;  %2893 = vmatprep.subr.mxu1 %v4309_v33 }
  0x90   :  { %2856 = vmatprep.subr.mxu0 %v4309_v33  ;;  %2894 = vmatpush3.msra.mxu1 %v3479_v25 }
  0x91   :  { %2857 = vmatpush3.msra.mxu0 %v3523_v45  ;;  %2895 = vmatprep.subr.mxu1 %v4309_v33 }
  0x92   :  { %2858 = vmatprep.subr.mxu0 %v4309_v33  ;;  %2896 = vmatpush3.msra.mxu1 %v3485_v28 }
  0x93   :  { %2859 = vmatpush3.msra.mxu0 %v3549_v56  ;;  %2897 = vmatprep.subr.mxu1 %v4309_v33 }
  0x94   :  { %2860 = vmatprep.subr.mxu0 %v4309_v33  ;;  %2898 = vmatpush3.msra.mxu1 %v3508_v39 }
  0x95   :  { %2861 = vmatpush3.msra.mxu0 %v3564_v61  ;;  %2899 = vmatprep.subr.mxu1 %v4309_v33 }
  0x96   :  { %2862 = vmatprep.subr.mxu0 %v4309_v33  ;;  %2900 = vmatpush3.msra.mxu1 %v3520_v44 }
  0x97   :  { %2863 = vmatpush3.msra.mxu0 %v3597_v31  ;;  %2901 = vmatprep.subr.mxu1 %v4309_v33 }
  0x98   :  { %2864 = vmatprep.subr.mxu0 %v4309_v33  ;;  %2876 = vmatprep.mubr.msk.f32.mxu0 %vm3350_vm0, %v4309_v33 }
  0x99   :  { %2865 = vmatpush3.msra.mxu0 %v3600_v32  ;;  %2902 = vmatpush3.msra.mxu1 %v3528_v48  ;;  %v3193_v32 = vld [vmem:[#allocation8 + $0x10] sm:$0xff]  }
  0x9a   :  { %2866 = vmatprep.subr.mxu0 %v4309_v33  ;;  %2903 = vmatprep.subr.mxu1 %v4309_v33 }
  0x9b   :  { %2867 = vmatpush3.msra.mxu0 %v4315_v38  ;;  %2904 = vmatpush3.msra.mxu1 %v3561_v60  ;;  %v3187_v38 = vld [vmem:[#allocation8 + $0x20] sm:$0xff]  }
  0x9c   :  { %2868 = vmatprep.subr.mxu0 %v4309_v33  ;;  %2905 = vmatprep.subr.mxu1 %v4309_v33 }
  0x9d   :  { %2869 = vmatpush3.msra.mxu0 %v4316_v34  ;;  %2906 = vmatpush3.msra.mxu1 %v3575_v3  ;;  %v3185_v34 = vld [vmem:[#allocation8 + $0xa8] sm:$0xff]  }
  0x9e   :  { %2870 = vmatprep.subr.mxu0 %v4309_v33  ;;  %2907 = vmatprep.subr.mxu1 %v4309_v33 }
  0x9f   :  { %2871 = vmatpush3.msra.mxu0 %v4317_v50  ;;  %2908 = vmatpush3.msra.mxu1 %v3586_v13  ;;  %v3184_v50 = vld [vmem:[#allocation8 + $0x28] sm:$0xff]  }
  0xa0   :  { %2872 = vmatprep.subr.mxu0 %v4309_v33  ;;  %2909 = vmatprep.subr.mxu1 %v4309_v33 }
  0xa1   :  { %2873 = vmatpush3.msra.mxu0 %v3659_v58  ;;  %2910 = vmatpush3.msra.mxu1 %v3607_v35  ;;  %v3182_v58 = vld [vmem:[#allocation8 + $0xb0] sm:$0xff]  }
  0xa2   :  { %2874 = vmatprep.subr.mxu0 %v4309_v33  ;;  %2911 = vmatprep.mubr.msk.f32.mxu1 %vm3350_vm0, %v4309_v33 }
  0xa3   :  { %2875 = vmatpush3.msra.mxu0 %v3678_v47  ;;  %2912 = vmatmul.mubr.f32.vlgmr.msra.gmra.mxu1 %v3711_v1  ;;  %v3183_v47 = vld [vmem:[#allocation8 + $0x68] sm:$0xff]  }
  0xa4   :  { %2877 = vmatmul.mubr.f32.vlgmr.msra.gmra.mxu0 %v3711_v1  ;;  %2526 = vmatprep.subr.bf16.mxu0 %v3177_v8  ;;  %v3186_v1 = vld [vmem:[#allocation8 + $0x60] sm:$0xff]  }
  0xa5   :  { %2527 = vmatpush3.bf16.msra.mxu0 %v3178_v9  ;;  %2914 = vmatprep.subr.bf16.mxu1 %v3179_v41  ;;  %v3188_v8 = vld [vmem:[#allocation8 + $0xa0] sm:$0xff]   ;;  %v3189_v9 = vld [vmem:[#allocation8 + $0x58] sm:$0xff]  }
  0xa6   :  { %2915 = vmatpush3.bf16.msra.mxu1 %v3179_v41  ;;  %2528 = vmatprep.subr.bf16.mxu0 %v3180_v53  ;;  %v3190_v41 = vld [vmem:[#allocation8 + $0x18] sm:$0xff]  }
  0xa7   :  { %2916 = vmatprep.subr.bf16.mxu1 %v3182_v58  ;;  %v3191_v53 = vld [vmem:[#allocation8 + $0x98] sm:$0xff]  }
  0xa9   :  { %2529 = vmatpush3.bf16.msra.mxu0 %v3181_v2  ;;  %v3192_v2 = vld [vmem:[#allocation8 + $0x50] sm:$0xff]  }
  0xaa   :  { %2917 = vmatpush3.bf16.msra.mxu1 %v3182_v58  ;;  %2530 = vmatprep.subr.bf16.mxu0 %v3183_v47  ;;  %v3194_v58 = vld [vmem:[#allocation8 + $0x90] sm:$0xff]   ;;  %v3195_v47 = vld [vmem:[#allocation8 + $0x48] sm:$0xff]  }
  0xab   :  { %2918 = vmatprep.subr.bf16.mxu1 %v3185_v34 }
  0xad   :  { %2531 = vmatpush3.bf16.msra.mxu0 %v3184_v50  ;;  %v3196_v50 = vld [vmem:[#allocation8 + $0x8] sm:$0xff]  }
  0xae   :  { %2919 = vmatpush3.bf16.msra.mxu1 %v3185_v34  ;;  %2532 = vmatprep.subr.bf16.mxu0 %v3186_v1  ;;  %v3197_v34 = vld [vmem:[#allocation8 + $0x88] sm:$0xff]   ;;  %v3200_v1 = vld [vmem:[#allocation8 + $0x80] sm:$0xff]  }
  0xaf   :  { %2920 = vmatprep.subr.bf16.mxu1 %v3188_v8 }
  0xb1   :  { %2533 = vmatpush3.bf16.msra.mxu0 %v3187_v38  ;;  %v3198_v38 = vld [vmem:[#allocation8 + $0x40] sm:$0xff]  }
  0xb2   :  { %2921 = vmatpush3.bf16.msra.mxu1 %v3188_v8  ;;  %2534 = vmatprep.subr.bf16.mxu0 %v3189_v9  ;;  %v3199_v8 = vld [vmem:[#allocation8] sm:$0xff]  }
  0xb3   :  { %2922 = vmatprep.subr.bf16.mxu1 %v3191_v53 }
  0xb5   :  { %2535 = vmatpush3.bf16.msra.mxu0 %v3190_v41 }
  0xb6   :  { %2923 = vmatpush3.bf16.msra.mxu1 %v3191_v53  ;;  %2536 = vmatprep.subr.bf16.mxu0 %v3192_v2 }
  0xb7   :  { %2924 = vmatprep.subr.bf16.mxu1 %v3194_v58 }
  0xb9   :  { %2537 = vmatpush3.bf16.msra.mxu0 %v3193_v32 }
  0xba   :  { %2925 = vmatpush3.bf16.msra.mxu1 %v3194_v58  ;;  %2538 = vmatprep.subr.bf16.mxu0 %v3195_v47 }
  0xbb   :  { %2926 = vmatprep.subr.bf16.mxu1 %v3197_v34 }
  0xbd   :  { %2539 = vmatpush3.bf16.msra.mxu0 %v3196_v50 }
  0xbe   :  { %2927 = vmatpush3.bf16.msra.mxu1 %v3197_v34  ;;  %2540 = vmatprep.subr.bf16.mxu0 %v3198_v38 }
  0xbf   :  { %2928 = vmatprep.subr.bf16.mxu1 %v3200_v1 }
  0xc1   :  { %2541 = vmatpush3.bf16.msra.mxu0 %v3199_v8 }
  0xc2   :  { %2929 = vmatpush3.bf16.msra.mxu1 %v3200_v1  ;;  %2934 = vmatprep.subr.mxu0 %v4309_v33 }
  0xc3   :  { %2969 = vmatprep.subr.mxu1 %v4309_v33 }
 0x11e   :  { %v442_v9 = vpop.f32.mrf.mxu1 }
 0x120   :  { %v2773_v41 = vpop.f32.mrf.mxu1 }
 0x124   :  { %v291_v32 = vpop.f32.mrf.mxu0 }
 0x125   :  { %v443_v61 = vadd.f32 %v442_v9, %v291_v32 }
 0x126   :  { %v2738_v53 = vpop.f32.mrf.mxu0 }
 0x127   :  { %v117_v53 = vlaneseq }
 0x129   :  { %v118_v14 = vshrl.u32 %v117_v53, 7  ;;  %v4321_v53 = vld [vmem:[#allocation26_spill] sm:$0xff] }
 0x13f   :  { %v635_v2 = vpop.f32.mrf.mxu1 }
 0x141   :  { %v2843_v58 = vpop.f32.mrf.mxu1 }
 0x142   :  { %v855_v58 = vunpack.c.l.s4 %v3351_v22  ;;  %v179_v22 = vld [vmem:[%s4234_s3] sm:$0x1] }
 0x144   :  { %v546_v47 = vpop.f32.mrf.mxu0 }
 0x145   :  { %v547_v50 = vadd.f32 %v546_v47, %v443_v61  ;;  %v119_v47 = vadd.s32 8, %v118_v14 }
 0x146   :  { %v2808_v31 = vpop.f32.mrf.mxu0 }
 0x147   :  { %v636_v56 = vadd.f32 %v635_v2, %v547_v50  ;;  %v856_v31 = vunpack.c.0.s8 %v855_v58 }
 0x149   :  { %v3870_v9 = vsub.s32 %v856_v31, %v118_v14  ;;  %v4322_v31 = vld [vmem:[#allocation30_spill] sm:$0xff] }
 0x14b   :  { %4318 = vst [vmem:[#allocation46_spill] sm:$0xff] %v3870_v9 }
 0x163   :  { %v841_v38 = vpop.f32.mrf.mxu1 }
 0x164   :  { %v754_v34 = vpop.f32.mrf.mxu0 }
 0x165   :  { %v755_v45 = vadd.f32 %v754_v34, %v636_v56  ;;  %v2913_v1 = vpop.f32.mrf.mxu1  ;;  %v4320_v34 = vld [vmem:[#allocation32_spill] sm:$0xff] }
 0x166   :  { %v2878_v8 = vpop.f32.mrf.mxu0  ;;  %v121_v1 = vadd.s32 24, %v118_v14 }
 0x167   :  { %v842_v40 = vadd.f32 %v841_v38, %v755_v45  ;;  %v126_v8 = vand.u32 15, %v118_v14 }
 0x169   :  { %v845_v29 = vmul.f32 0.001953125, %v842_v40  ;;  %v178_v40 = vld [vmem:[%s4233_s2] sm:$0x1]  ;;  %vm3893_vm2 = vcmp.ne.s32.totalorder %v126_v8, 0 }
 0x16a   :  { %vm3914_vm11 = vmpackc.low %vm3352_vm10, %vm3893_vm2 }
 0x16b   :  { %v846_v27 = vmul.f32 %v845_v29, %v845_v29 }
 0x16d   :  { %v848_v24 = vrot.slane %v846_v27, 7 }
 0x16f   :  { %v850_v23 = vsub.f32 %v845_v29, %v848_v24  ;;  %v3877_v24 = vsub.s32 0, %v118_v14 }
 0x171   :  { %v851_v41 = vadd.f32 1e-05, %v850_v23  ;;  %4319 = vst [vmem:[#allocation47_spill] sm:$0xff] %v3877_v24 }
 0x173   :  { %3225 = vrsqrt.f32 %v851_v41 }
 0x180   :  { %v3226_v61 = vpop.eup %3225 }
 0x181   :  { %v860_v32 = vrot.slane %v3226_v61, %v3870_v9 }
 0x183   :  { %v861_v56 = vcombine.high %v860_v32, %v860_v32  ;;  %v4323_v32 = vld [vmem:[#allocation34_spill] sm:$0xff] }
 0x185   :  { %v868_v27 = vrot.slane %v861_v56, %v3870_v9 }
 0x187   :  { %v870_v23 = vmul.f32 %v868_v27, %v178_v40  ;;  %v133_v40 = vand.u32 15, %v119_v47 }
 0x189   :  { %v871_v45 = vmul.f32 %v870_v23, %v845_v29  ;;  %v877_v2 = vrot.slane %v870_v23, %v3877_v24  ;;  %v3891_v29 = vstv %s4241_s10  ;;  %vm3901_vm8 = vcmp.ne.s32.totalorder %v133_v40, 15 }
 0x18a   :  { %4324 = vst [vmem:[#allocation32_spill] sm:$0xff] %v3891_v29  ;;  %vm3923_vm12 = vmpackc.low %vm3901_vm8, %vm3352_vm10 }
 0x18b   :  { %v872_v50 = vsub.f32 %v179_v22, %v871_v45  ;;  %v881_v38 = vmul.f32 %v877_v2, %v4320_v34  ;;  %v879_v58 = vmul.f32 %v877_v2, %v4321_v53  ;;  %v880_v61 = vmul.f32 %v877_v2, %v4322_v31 }
 0x18c   :  { %v882_v56 = vmul.f32 %v877_v2, %v4323_v32 }
 0x18d   :  { %v887_v41 = vrot.slane %v872_v50, %v3877_v24  ;;  %v147_v50 = vand.u32 15, %v121_v1 }
 0x18f   :  { %v891_v27 = vadd.f32 %v887_v41, %v881_v38  ;;  %v889_v23 = vadd.f32 %v887_v41, %v879_v58  ;;  %v890_v22 = vadd.f32 %v887_v41, %v880_v61  ;;  %v892_v45 = vadd.f32 %v887_v41, %v882_v56 }
 0x190   :  { %v120_v58 = vadd.s32 16, %v118_v14  ;;  %vm3905_vm9 = vcmp.ne.s32.totalorder %v147_v50, 15 }
 0x191   :  { %vm893_vm4 = vcmp.ge.f32.partialorder %v889_v23, 0.0  ;;  %vm894_vm5 = vcmp.ge.f32.partialorder %v890_v22, 0.0  ;;  %v898_v2 = vmul.f32 %v3891_v29, %v889_v23  ;;  %v899_v53 = vmul.f32 %v3891_v29, %v890_v22  ;;  %vm3934_vm13 = vmpackc.low %vm3905_vm9, %vm3352_vm10 }
 0x192   :  { %vm895_vm6 = vcmp.ge.f32.partialorder %v891_v27, 0.0  ;;  %v900_v31 = vmul.f32 %v3891_v29, %v891_v27  ;;  %vm896_vm7 = vcmp.ge.f32.partialorder %v892_v45, 0.0  ;;  %v901_v47 = vmul.f32 %v3891_v29, %v892_v45 }
 0x193   :  { %v902_v38 = vsel %vm893_vm4, %v889_v23, %v898_v2  ;;  %v903_v41 = vsel %vm894_vm5, %v890_v22, %v899_v53  ;;  %v140_v50 = vand.u32 15, %v120_v58 }
 0x194   :  { %v959_v1 = vrot.slane %v902_v38, 7  ;;  %v960_v61 = vrot.slane %v903_v41, 7  ;;  %v972_v32 = vrot.slane %v902_v38, 1  ;;  %v973_v56 = vrot.slane %v903_v41, 1 }
 0x195   :  { %v994_v24 = vpack.c.bf16 %v903_v41, %v902_v38  ;;  %v904_v9 = vsel %vm895_vm6, %v891_v27, %v900_v31  ;;  %v905_v59 = vsel %vm896_vm7, %v892_v45, %v901_v47  ;;  %vm2421_vm14 = vcmp.ne.s32.totalorder %v140_v50, 0 }
 0x196   :  { %v961_v29 = vsel %vm202_vm1, %v959_v1, %v960_v61  ;;  %v970_v23 = vsel %vm202_vm1, 0.0, %v959_v1  ;;  %v974_v40 = vsel %vm971_vm3, %v972_v32, %v973_v56  ;;  %v975_v27 = vrot.slane %v904_v9, 1  ;;  %vm3950_vm15 = vmpackc.low %vm3352_vm10, %vm2421_vm14  ;;  %v4340_v32 = vld [vmem:[#allocation23_spill] sm:$0xff] }
 0x197   :  { %1180 = vmatprep.mubr.bf16.mxu0 %v994_v24  ;;  %v2365_v22 = vpack.c.bf16 %v961_v29, %v970_v23  ;;  %v977_v45 = vrot.slane %v905_v59, 1  ;;  %v964_v34 = vrot.slane %v905_v59, 7  ;;  %v995_v31 = vpack.c.bf16 %v905_v59, %v904_v9  ;;  %v4343_v23 = vld [vmem:[#allocation28_spill] sm:$0xff] }
 0x198   :  { %v976_v2 = vsel %vm971_vm3, %v973_v56, %v975_v27  ;;  %v962_v47 = vrot.slane %v904_v9, 7  ;;  %v4337_v9 = vld [vmem:[#allocation22_spill] sm:$0xff]  ;;  %v4342_v56 = vld [vmem:[#allocation27_spill] sm:$0xff] }
 0x199   :  { %2366 = vmatmul.mubr.msk.bf16.vlgmr.msra.gmra.mxu0 %vm3914_vm11, %v2365_v22  ;;  %v2373_v38 = vpack.c.bf16 %v976_v2, %v974_v40  ;;  %v978_v24 = vsel %vm971_vm3, %v975_v27, %v977_v45  ;;  %v983_v29 = vsel %vm971_vm3, %v977_v45, 0.0  ;;  %v4344_v40 = vld [vmem:[#allocation33_spill] sm:$0xff]  ;;  %v4345_v27 = vld [vmem:[#allocation38_spill] sm:$0xff] }
 0x19a   :  { %1188 = vmatprep.mubr.bf16.mxu0 %v995_v31  ;;  %v2377_v8 = vpack.c.bf16 %v983_v29, %v978_v24  ;;  %2935 = vmatpush3.msra.mxu0 %v3438_v4  ;;  %v963_v59 = vsel %vm202_vm1, %v960_v61, %v962_v47  ;;  %v965_v0 = vsel %vm202_vm1, %v962_v47, %v964_v34  ;;  %v4341_v61 = vld [vmem:[#allocation25_spill] sm:$0xff] }
 0x19b   :  { %2930 = vmatprep.mubr.msk.bf16.mxu1 %vm3923_vm12, %v2373_v38  ;;  %2936 = vmatprep.subr.mxu0 %v4309_v33  ;;  %v2369_v1 = vpack.c.bf16 %v965_v0, %v963_v59 }
 0x19c   :  { %2931 = vmatmul.mubr.msk.bf16.vlgmr.msra.gmra.mxu1 %vm3934_vm13, %v2377_v8  ;;  %2937 = vmatpush3.msra.mxu0 %v3440_v5 }
 0x19d   :  { %2970 = vmatpush3.msra.mxu1 %v4337_v9  ;;  %2938 = vmatprep.subr.mxu0 %v4309_v33 }
 0x19e   :  { %2971 = vmatprep.subr.mxu1 %v4309_v33  ;;  %2939 = vmatpush3.msra.mxu0 %v3442_v6 }
 0x19f   :  { %2972 = vmatpush3.msra.mxu1 %v4340_v32  ;;  %2940 = vmatprep.subr.mxu0 %v4309_v33 }
 0x1a0   :  { %2973 = vmatprep.subr.mxu1 %v4309_v33  ;;  %2941 = vmatpush3.msra.mxu0 %v3444_v10 }
 0x1a1   :  { %2370 = vmatmul.mubr.msk.bf16.gmra.mxu0 %vm3950_vm15, %v2369_v1  ;;  %2974 = vmatpush3.msra.mxu1 %v4341_v61 }
 0x1a2   :  { %2975 = vmatprep.subr.mxu1 %v4309_v33  ;;  %2942 = vmatprep.subr.mxu0 %v4309_v33 }
 0x1a3   :  { %2976 = vmatpush3.msra.mxu1 %v4342_v56  ;;  %2943 = vmatpush3.msra.mxu0 %v3446_v11 }
 0x1a4   :  { %2977 = vmatprep.subr.mxu1 %v4309_v33  ;;  %2944 = vmatprep.subr.mxu0 %v4309_v33 }
 0x1a5   :  { %2978 = vmatpush3.msra.mxu1 %v4343_v23  ;;  %2945 = vmatpush3.msra.mxu0 %v3448_v12 }
 0x1a6   :  { %2979 = vmatprep.subr.mxu1 %v4309_v33  ;;  %2946 = vmatprep.subr.mxu0 %v4309_v33 }
 0x1a7   :  { %2980 = vmatpush3.msra.mxu1 %v4344_v40  ;;  %2947 = vmatpush3.msra.mxu0 %v3457_v17 }
 0x1a8   :  { %2981 = vmatprep.subr.mxu1 %v4309_v33  ;;  %2948 = vmatprep.subr.mxu0 %v4309_v33 }
 0x1a9   :  { %2982 = vmatpush3.msra.mxu1 %v4345_v27  ;;  %2949 = vmatpush3.msra.mxu0 %v3479_v25 }
 0x1aa   :  { %2983 = vmatprep.subr.mxu1 %v4309_v33  ;;  %2950 = vmatprep.subr.mxu0 %v4309_v33 }
 0x1ab   :  { %2984 = vmatpush3.msra.mxu1 %v3623_v43  ;;  %2951 = vmatpush3.msra.mxu0 %v3485_v28 }
 0x1ac   :  { %2985 = vmatprep.subr.mxu1 %v4309_v33  ;;  %2952 = vmatprep.subr.mxu0 %v4309_v33 }
 0x1ad   :  { %2986 = vmatpush3.msra.mxu1 %v3656_v51  ;;  %2953 = vmatpush3.msra.mxu0 %v3508_v39 }
 0x1ae   :  { %2987 = vmatprep.subr.mxu1 %v4309_v33  ;;  %2954 = vmatprep.subr.mxu0 %v4309_v33 }
 0x1af   :  { %2988 = vmatpush3.msra.mxu1 %v3671_v54  ;;  %2955 = vmatpush3.msra.mxu0 %v3520_v44 }
 0x1b0   :  { %2989 = vmatprep.subr.mxu1 %v4309_v33  ;;  %2956 = vmatprep.subr.mxu0 %v4309_v33 }
 0x1b1   :  { %2990 = vmatpush3.msra.mxu1 %v3673_v55  ;;  %2957 = vmatpush3.msra.mxu0 %v3528_v48 }
 0x1b2   :  { %2991 = vmatprep.subr.mxu1 %v4309_v33  ;;  %2958 = vmatprep.subr.mxu0 %v4309_v33 }
 0x1b3   :  { %2992 = vmatpush3.msra.mxu1 %v3675_v26  ;;  %3001 = vmatprep.mubr.msk.f32.mxu1 %vm3350_vm0, %v4309_v33  ;;  %v2338_v26 = vld [vmem:[%s4236_s5] ss:$0 sm:$0xff] }
 0x1b4   :  { %2993 = vmatprep.subr.mxu1 %v4309_v33  ;;  %2959 = vmatpush3.msra.mxu0 %v3561_v60 }
 0x1b5   :  { %2994 = vmatpush3.msra.mxu1 %v3682_v46  ;;  %2960 = vmatprep.subr.mxu0 %v4309_v33 }
 0x1b6   :  { %2995 = vmatprep.subr.mxu1 %v4309_v33  ;;  %2961 = vmatpush3.msra.mxu0 %v3575_v3 }
 0x1b7   :  { %2996 = vmatpush3.msra.mxu1 %v3684_v37  ;;  %2962 = vmatprep.subr.mxu0 %v4309_v33 }
 0x1b8   :  { %2997 = vmatprep.subr.mxu1 %v4309_v33  ;;  %2963 = vmatpush3.msra.mxu0 %v3586_v13 }
 0x1b9   :  { %2998 = vmatpush3.msra.mxu1 %v3700_v63  ;;  %2964 = vmatprep.subr.mxu0 %v4309_v33 }
 0x1ba   :  { %2999 = vmatprep.subr.mxu1 %v4309_v33  ;;  %2965 = vmatpush3.msra.mxu0 %v3607_v35 }
 0x1bb   :  { %3000 = vmatpush3.msra.mxu1 %v3714_v19  ;;  %2966 = vmatprep.mubr.msk.f32.mxu0 %vm3350_vm0, %v4309_v33 }
 0x1bc   :  { %3039 = vmatprep.subr.mxu1 %v4309_v33  ;;  %3004 = vmatprep.subr.mxu0 %v4309_v33 }
 0x259   :  { %v2542_v43 = vpop.f32.mrf.mxu0 }
 0x25b   :  { %v2543_v37 = vpop.f32.mrf.mxu0 }
 0x25c   :  { %v2932_v46 = vpop.f32.mrf.mxu1  ;;  %v2544_v54 = vadd.f32 %v2543_v37, %v2542_v43 }
 0x25d   :  { %v2545_v51 = vpop.f32.mrf.mxu0 }
 0x25e   :  { %v1231_v55 = vpop.f32.mrf.mxu1  ;;  %v1183_v50 = vadd.f32 %v2544_v54, %v2338_v26 }
 0x25f   :  { %v2546_v63 = vpop.f32.mrf.mxu0 }
 0x260   :  { %v2933_v22 = vpop.f32.mrf.mxu1  ;;  %v2547_v19 = vadd.f32 %v2546_v63, %v2545_v51  ;;  %v4024_v29 = vadd.f32 %v1231_v55, %v1183_v50 }
 0x261   :  { %v2548_v45 = vpop.f32.mrf.mxu0 }
 0x262   :  { %v1186_v2 = vadd.f32 %v2547_v19, %v2338_v26  ;;  %v1234_v34 = vpop.f32.mrf.mxu1  ;;  %v1257_v32 = vmul.f32 %v4024_v29, %v4024_v29 }
 0x263   :  { %v2549_v31 = vpop.f32.mrf.mxu0 }
 0x264   :  { %v4022_v47 = vadd.f32 %v1234_v34, %v1186_v2  ;;  %v2550_v38 = vadd.f32 %v2549_v31, %v2548_v45 }
 0x265   :  { %v2551_v24 = vpop.f32.mrf.mxu0 }
 0x266   :  { %v1191_v8 = vadd.f32 %v2550_v38, %v2338_v26  ;;  %v1258_v0 = vmul.f32 %v4022_v47, %v4022_v47  ;;  %v1248_v61 = vadd.f32 %v4022_v47, %v4024_v29 }
 0x267   :  { %v2552_v59 = vpop.f32.mrf.mxu0 }
 0x268   :  { %v4028_v9 = vadd.f32 %v2932_v46, %v1191_v8  ;;  %v2553_v1 = vadd.f32 %v2552_v59, %v2551_v24  ;;  %v1261_v40 = vadd.f32 %v1258_v0, %v1257_v32 }
 0x26a   :  { %v1259_v56 = vmul.f32 %v4028_v9, %v4028_v9  ;;  %v1194_v23 = vadd.f32 %v2553_v1, %v2338_v26  ;;  %v1249_v27 = vadd.f32 %v1248_v61, %v4028_v9 }
 0x26c   :  { %v4037_v43 = vadd.f32 %v2933_v22, %v1194_v23  ;;  %v1262_v37 = vadd.f32 %v1261_v40, %v1259_v56  ;;  %v3212_v56 = vld [vmem:[#allocation9 + $0xa0] sm:$0xff]   ;;  %v3213_v23 = vld [vmem:[#allocation9 + $0x58] sm:$0xff]  }
 0x26d   :  { %v3214_v40 = vld [vmem:[#allocation9 + $0x18] sm:$0xff]  }
 0x26e   :  { %v1250_v46 = vadd.f32 %v1249_v27, %v4037_v43  ;;  %v1260_v51 = vmul.f32 %v4037_v43, %v4037_v43  ;;  %v3215_v27 = vld [vmem:[#allocation9 + $0x98] sm:$0xff]  }
 0x270   :  { %v1251_v54 = vrot.slane %v1250_v46, 4  ;;  %v1263_v55 = vadd.f32 %v1262_v37, %v1260_v51  ;;  %v3216_v37 = vld [vmem:[#allocation9 + $0x50] sm:$0xff]  }
 0x271   :  { %v3218_v51 = vld [vmem:[#allocation9 + $0x90] sm:$0xff]  }
 0x272   :  { %v1252_v63 = vadd.f32 %v1251_v54, %v1250_v46  ;;  %v1264_v19 = vrot.slane %v1263_v55, 4  ;;  %v3217_v46 = vld [vmem:[#allocation9 + $0x10] sm:$0xff]   ;;  %v3219_v54 = vld [vmem:[#allocation9 + $0x48] sm:$0xff]  }
 0x274   :  { %v1253_v45 = vrot.slane %v1252_v63, 2  ;;  %v1265_v50 = vadd.f32 %v1264_v19, %v1263_v55  ;;  %v3221_v55 = vld [vmem:[#allocation9 + $0x88] sm:$0xff]   ;;  %v3222_v19 = vld [vmem:[#allocation9 + $0x40] sm:$0xff]  }
 0x276   :  { %v1254_v2 = vadd.f32 %v1253_v45, %v1252_v63  ;;  %v1266_v34 = vrot.slane %v1265_v50, 2  ;;  %v3220_v63 = vld [vmem:[#allocation9 + $0x8] sm:$0xff]   ;;  %v3223_v45 = vld [vmem:[#allocation9] sm:$0xff]  }
 0x278   :  { %v1255_v26 = vrot.slane %v1254_v2, 1  ;;  %v1267_v31 = vadd.f32 %v1266_v34, %v1265_v50  ;;  %v3224_v50 = vld [vmem:[#allocation9 + $0x80] sm:$0xff]  }
 0x27a   :  { %v1268_v38 = vrot.slane %v1267_v31, 1  ;;  %v1256_v24 = vadd.f32 %v1255_v26, %v1254_v2 }
 0x27c   :  { %v1269_v22 = vadd.f32 %v1268_v38, %v1267_v31 }
 0x27e   :  { %v1270_v8 = vsel %vm202_vm1, %v1256_v24, %v1269_v22 }
 0x27f   :  { %v4043_v59 = vand.u32 4294901760, %v1270_v8 }
 0x281   :  { %v4046_v0 = vsub.f32 %v1270_v8, %v4043_v59  ;;  %3002 = vmatmul.mubr.f32.vlgmr.msra.gmra.mxu1 %v4043_v59 }
 0x282   :  { %3040 = vmatpush3.msra.mxu1 %v3438_v4  ;;  %3071 = vmatprep.mubr.msk.f32.mxu1 %vm3350_vm0, %v4309_v33 }
 0x283   :  { %v1354_v1 = vand.u32 4294901760, %v4046_v0  ;;  %3041 = vmatprep.subr.mxu1 %v4309_v33 }
 0x284   :  { %3042 = vmatpush3.msra.mxu1 %v3440_v5 }
 0x285   :  { %3043 = vmatprep.subr.mxu1 %v4309_v33  ;;  %v1355_v32 = vsub.f32 %v4046_v0, %v1354_v1 }
 0x286   :  { %3044 = vmatpush3.msra.mxu1 %v3442_v6 }
 0x287   :  { %3045 = vmatprep.subr.mxu1 %v4309_v33  ;;  %v1356_v61 = vand.u32 4294901760, %v1355_v32 }
 0x288   :  { %3046 = vmatpush3.msra.mxu1 %v3444_v10 }
 0x289   :  { %3047 = vmatprep.subr.mxu1 %v4309_v33  ;;  %2967 = vmatmul.mubr.f32.vlgmr.msra.gmra.mxu0 %v1356_v61 }
 0x28a   :  { %3005 = vmatpush3.msra.mxu0 %v3452_v15  ;;  %3048 = vmatpush3.msra.mxu1 %v3446_v11  ;;  %v4346_v15 = vld [vmem:[#allocation39_spill] sm:$0xff] }
 0x28b   :  { %3006 = vmatprep.subr.mxu0 %v4309_v33  ;;  %3049 = vmatprep.subr.mxu1 %v4309_v33 }
 0x28c   :  { %3007 = vmatpush3.msra.mxu0 %v3455_v16  ;;  %3050 = vmatpush3.msra.mxu1 %v3448_v12  ;;  %v4347_v16 = vld [vmem:[#allocation40_spill] sm:$0xff] }
 0x28d   :  { %3008 = vmatprep.subr.mxu0 %v4309_v33  ;;  %3051 = vmatprep.subr.mxu1 %v4309_v33 }
 0x28e   :  { %3009 = vmatpush3.msra.mxu0 %v3460_v18  ;;  %3052 = vmatpush3.msra.mxu1 %v3457_v17  ;;  %v4355_v18 = vld [vmem:[#allocation24_spill] sm:$0xff] }
 0x28f   :  { %3010 = vmatprep.subr.mxu0 %v4309_v33  ;;  %3053 = vmatprep.subr.mxu1 %v4309_v33 }
 0x290   :  { %3011 = vmatpush3.msra.mxu0 %v3464_v20  ;;  %3054 = vmatpush3.msra.mxu1 %v3479_v25  ;;  %v4356_v20 = vld [vmem:[#allocation29_spill] sm:$0xff] }
 0x291   :  { %3012 = vmatprep.subr.mxu0 %v4309_v33  ;;  %3055 = vmatprep.subr.mxu1 %v4309_v33 }
 0x292   :  { %3013 = vmatpush3.msra.mxu0 %v3467_v21  ;;  %3056 = vmatpush3.msra.mxu1 %v3485_v28  ;;  %v4357_v21 = vld [vmem:[#allocation31_spill] sm:$0xff] }
 0x293   :  { %3014 = vmatprep.subr.mxu0 %v4309_v33  ;;  %3057 = vmatprep.subr.mxu1 %v4309_v33 }
 0x294   :  { %3015 = vmatpush3.msra.mxu0 %v3491_v30  ;;  %3058 = vmatpush3.msra.mxu1 %v3508_v39  ;;  %v4360_v30 = vld [vmem:[#allocation37_spill] sm:$0xff] }
 0x295   :  { %3016 = vmatprep.subr.mxu0 %v4309_v33  ;;  %3059 = vmatprep.subr.mxu1 %v4309_v33 }
 0x296   :  { %3017 = vmatpush3.msra.mxu0 %v3501_v36  ;;  %3060 = vmatpush3.msra.mxu1 %v3520_v44  ;;  %v4361_v36 = vld [vmem:[#allocation41_spill] sm:$0xff] }
 0x297   :  { %3018 = vmatprep.subr.mxu0 %v4309_v33  ;;  %3061 = vmatprep.subr.mxu1 %v4309_v33 }
 0x298   :  { %3019 = vmatpush3.msra.mxu0 %v3531_v49  ;;  %3062 = vmatpush3.msra.mxu1 %v3528_v48  ;;  %v3202_v49 = vld [vmem:[#allocation9 + $0x38] sm:$0xff]  }
 0x299   :  { %3020 = vmatprep.subr.mxu0 %v4309_v33  ;;  %3063 = vmatprep.subr.mxu1 %v4309_v33 }
 0x29a   :  { %3021 = vmatpush3.msra.mxu0 %v3538_v52  ;;  %3064 = vmatpush3.msra.mxu1 %v3561_v60  ;;  %v3203_v52 = vld [vmem:[#allocation9 + $0xb8] sm:$0xff]  }
 0x29b   :  { %3022 = vmatprep.subr.mxu0 %v4309_v33  ;;  %3065 = vmatprep.subr.mxu1 %v4309_v33 }
 0x29c   :  { %3023 = vmatpush3.msra.mxu0 %v3552_v57  ;;  %3066 = vmatpush3.msra.mxu1 %v3575_v3  ;;  %v3204_v57 = vld [vmem:[#allocation9 + $0x70] sm:$0xff]  }
 0x29d   :  { %3024 = vmatprep.subr.mxu0 %v4309_v33  ;;  %3067 = vmatprep.subr.mxu1 %v4309_v33 }
 0x29e   :  { %3025 = vmatpush3.msra.mxu0 %v3567_v62  ;;  %3068 = vmatpush3.msra.mxu1 %v3586_v13  ;;  %v3206_v62 = vld [vmem:[#allocation9 + $0xb0] sm:$0xff]  }
 0x29f   :  { %3026 = vmatprep.subr.mxu0 %v4309_v33  ;;  %3069 = vmatprep.subr.mxu1 %v4309_v33 }
 0x2a0   :  { %3027 = vmatpush3.msra.mxu0 %v3578_v7  ;;  %3070 = vmatpush3.msra.mxu1 %v3607_v35  ;;  %v3208_v7 = vld [vmem:[#allocation9 + $0x28] sm:$0xff]  }
 0x2a1   :  { %3028 = vmatprep.subr.mxu0 %v4309_v33  ;;  %3072 = vmatmul.mubr.f32.vlgmr.msra.gmra.mxu1 %v1354_v1 }
 0x2a2   :  { %3109 = vmatprep.subr.mxu1 %v4309_v33  ;;  %3029 = vmatpush3.msra.mxu0 %v3627_v42  ;;  %v4363_v42 = vld [vmem:[#allocation44_spill] sm:$0xff] }
 0x2a3   :  { %3110 = vmatpush3.msra.mxu1 %v3438_v4  ;;  %3030 = vmatprep.subr.mxu0 %v4309_v33  ;;  %v4348_v4 = vld [vmem:[#allocation43_spill] sm:$0xff] }
 0x2a4   :  { %3111 = vmatprep.subr.mxu1 %v4309_v33  ;;  %3031 = vmatpush3.msra.mxu0 %v4346_v15 }
 0x2a5   :  { %3112 = vmatpush3.msra.mxu1 %v3440_v5  ;;  %3032 = vmatprep.subr.mxu0 %v4309_v33  ;;  %v4349_v5 = vld [vmem:[#allocation16_spill] sm:$0xff] }
 0x2a6   :  { %3113 = vmatprep.subr.mxu1 %v4309_v33  ;;  %3033 = vmatpush3.msra.mxu0 %v4347_v16 }
 0x2a7   :  { %3114 = vmatpush3.msra.mxu1 %v3442_v6  ;;  %3034 = vmatprep.subr.mxu0 %v4309_v33  ;;  %v4350_v6 = vld [vmem:[#allocation17_spill] sm:$0xff] }
 0x2a8   :  { %3115 = vmatprep.subr.mxu1 %v4309_v33  ;;  %3035 = vmatpush3.msra.mxu0 %v4348_v4 }
 0x2a9   :  { %3036 = vmatprep.mubr.msk.f32.mxu0 %vm3350_vm0, %v4309_v33  ;;  %3116 = vmatpush3.msra.mxu1 %v3444_v10  ;;  %v4351_v10 = vld [vmem:[#allocation18_spill] sm:$0xff] }
 0x2aa   :  { %3037 = vmatmul.mubr.f32.vlgmr.msra.gmra.mxu0 %v4046_v0  ;;  %3074 = vmatprep.subr.mxu0 %v4309_v33 }
 0x2ab   :  { %3117 = vmatprep.subr.mxu1 %v4309_v33  ;;  %3075 = vmatpush3.msra.mxu0 %v4349_v5 }
 0x2ac   :  { %3118 = vmatpush3.msra.mxu1 %v3446_v11  ;;  %3076 = vmatprep.subr.mxu0 %v4309_v33  ;;  %v4352_v11 = vld [vmem:[#allocation19_spill] sm:$0xff] }
 0x2ad   :  { %3119 = vmatprep.subr.mxu1 %v4309_v33  ;;  %3077 = vmatpush3.msra.mxu0 %v4350_v6 }
 0x2ae   :  { %3120 = vmatpush3.msra.mxu1 %v3448_v12  ;;  %3078 = vmatprep.subr.mxu0 %v4309_v33  ;;  %v4353_v12 = vld [vmem:[#allocation20_spill] sm:$0xff] }
 0x2af   :  { %3121 = vmatprep.subr.mxu1 %v4309_v33  ;;  %3079 = vmatpush3.msra.mxu0 %v4351_v10 }
 0x2b0   :  { %3122 = vmatpush3.msra.mxu1 %v3457_v17  ;;  %3080 = vmatprep.subr.mxu0 %v4309_v33  ;;  %v4354_v17 = vld [vmem:[#allocation21_spill] sm:$0xff] }
 0x2b1   :  { %3123 = vmatprep.subr.mxu1 %v4309_v33  ;;  %3081 = vmatpush3.msra.mxu0 %v4352_v11 }
 0x2b2   :  { %3124 = vmatpush3.msra.mxu1 %v3479_v25  ;;  %3082 = vmatprep.subr.mxu0 %v4309_v33  ;;  %v4358_v25 = vld [vmem:[#allocation35_spill] sm:$0xff] }
 0x2b3   :  { %3125 = vmatprep.subr.mxu1 %v4309_v33  ;;  %3083 = vmatpush3.msra.mxu0 %v4353_v12 }
 0x2b4   :  { %3126 = vmatpush3.msra.mxu1 %v3485_v28  ;;  %3084 = vmatprep.subr.mxu0 %v4309_v33  ;;  %v4359_v28 = vld [vmem:[#allocation36_spill] sm:$0xff] }
 0x2b5   :  { %3127 = vmatprep.subr.mxu1 %v4309_v33  ;;  %3085 = vmatpush3.msra.mxu0 %v4354_v17 }
 0x2b6   :  { %3128 = vmatpush3.msra.mxu1 %v3508_v39  ;;  %3086 = vmatprep.subr.mxu0 %v4309_v33  ;;  %v4362_v39 = vld [vmem:[#allocation42_spill] sm:$0xff] }
 0x2b7   :  { %3129 = vmatprep.subr.mxu1 %v4309_v33  ;;  %3087 = vmatpush3.msra.mxu0 %v4355_v18 }
 0x2b8   :  { %3130 = vmatpush3.msra.mxu1 %v3520_v44  ;;  %3088 = vmatprep.subr.mxu0 %v4309_v33  ;;  %v4364_v44 = vld [vmem:[#allocation45_spill] sm:$0xff] }
 0x2b9   :  { %3131 = vmatprep.subr.mxu1 %v4309_v33  ;;  %3089 = vmatpush3.msra.mxu0 %v4356_v20  ;;  %v4365_v20 = vld [vmem:[#allocation46_spill] sm:$0xff] }
 0x2ba   :  { %3132 = vmatpush3.msra.mxu1 %v3528_v48  ;;  %3090 = vmatprep.subr.mxu0 %v4309_v33  ;;  %v3201_v48 = vld [vmem:[#allocation9 + $0x78] sm:$0xff]  }
 0x2bb   :  { %3133 = vmatprep.subr.mxu1 %v4309_v33  ;;  %3091 = vmatpush3.msra.mxu0 %v4357_v21 }
 0x2bc   :  { %3134 = vmatpush3.msra.mxu1 %v3561_v60  ;;  %3092 = vmatprep.subr.mxu0 %v4309_v33  ;;  %v3205_v60 = vld [vmem:[#allocation9 + $0x30] sm:$0xff]  }
 0x2bd   :  { %3135 = vmatprep.subr.mxu1 %v4309_v33  ;;  %3093 = vmatpush3.msra.mxu0 %v4358_v25 }
 0x2be   :  { %3136 = vmatpush3.msra.mxu1 %v3575_v3  ;;  %3094 = vmatprep.subr.mxu0 %v4309_v33  ;;  %v3207_v3 = vld [vmem:[#allocation9 + $0x68] sm:$0xff]  }
 0x2bf   :  { %3137 = vmatprep.subr.mxu1 %v4309_v33  ;;  %3095 = vmatpush3.msra.mxu0 %v4359_v28  ;;  %v1246_v28 = vld [vmem:[%s4237_s6] sm:$0x1] }
 0x2c0   :  { %3138 = vmatpush3.msra.mxu1 %v3586_v13  ;;  %3096 = vmatprep.subr.mxu0 %v4309_v33  ;;  %v3209_v13 = vld [vmem:[#allocation9 + $0xa8] sm:$0xff]  }
 0x2c1   :  { %3139 = vmatprep.subr.mxu1 %v4309_v33  ;;  %3097 = vmatpush3.msra.mxu0 %v4360_v30 }
 0x2c2   :  { %3140 = vmatpush3.msra.mxu1 %v3607_v35  ;;  %3141 = vmatprep.mubr.msk.f32.mxu1 %vm3350_vm0, %v4309_v33  ;;  %v3210_v35 = vld [vmem:[#allocation9 + $0x60] sm:$0xff]  }
 0x2c3   :  { %3098 = vmatprep.subr.mxu0 %v4309_v33  ;;  %3142 = vmatmul.mubr.f32.vlgmr.msra.gmra.mxu1 %v4043_v59 }
 0x2c4   :  { %3099 = vmatpush3.msra.mxu0 %v4361_v36  ;;  %3106 = vmatprep.mubr.msk.f32.mxu0 %vm3350_vm0, %v4309_v33 }
 0x2c5   :  { %3100 = vmatprep.subr.mxu0 %v4309_v33  ;;  %3144 = vmatprep.subr.bf16.mxu1 %v3203_v52 }
 0x2c6   :  { %3101 = vmatpush3.msra.mxu0 %v4362_v39  ;;  %3145 = vmatpush3.bf16.msra.mxu1 %v3203_v52  ;;  %v1247_v39 = vld [vmem:[%s4238_s7] sm:$0x1] }
 0x2c7   :  { %3102 = vmatprep.subr.mxu0 %v4309_v33  ;;  %3146 = vmatprep.subr.bf16.mxu1 %v3206_v62 }
 0x2c8   :  { %3103 = vmatpush3.msra.mxu0 %v4363_v42 }
 0x2c9   :  { %3104 = vmatprep.subr.mxu0 %v4309_v33  ;;  %v3211_v33 = vld [vmem:[#allocation9 + $0x20] sm:$0xff]  }
 0x2ca   :  { %3105 = vmatpush3.msra.mxu0 %v4364_v44  ;;  %3147 = vmatpush3.bf16.msra.mxu1 %v3206_v62  ;;  %v4366_v44 = vld [vmem:[#allocation47_spill] sm:$0xff] }
 0x2cb   :  { %3107 = vmatmul.mubr.f32.vlgmr.msra.gmra.mxu0 %v4043_v59  ;;  %2666 = vmatprep.subr.bf16.mxu0 %v3201_v48 }
 0x2cc   :  { %2667 = vmatpush3.bf16.msra.mxu0 %v3202_v49  ;;  %3148 = vmatprep.subr.bf16.mxu1 %v3209_v13 }
 0x2cd   :  { %2668 = vmatprep.subr.bf16.mxu0 %v3204_v57 }
 0x2ce   :  { %3149 = vmatpush3.bf16.msra.mxu1 %v3209_v13 }
 0x2cf   :  { %3150 = vmatprep.subr.bf16.mxu1 %v3212_v56 }
 0x2d0   :  { %2669 = vmatpush3.bf16.msra.mxu0 %v3205_v60 }
 0x2d1   :  { %2670 = vmatprep.subr.bf16.mxu0 %v3207_v3 }
 0x2d2   :  { %3151 = vmatpush3.bf16.msra.mxu1 %v3212_v56  ;;  %v4367_v56 = vld [vmem:[#allocation32_spill] sm:$0xff] }
 0x2d3   :  { %3152 = vmatprep.subr.bf16.mxu1 %v3215_v27 }
 0x2d4   :  { %2671 = vmatpush3.bf16.msra.mxu0 %v3208_v7 }
 0x2d5   :  { %2672 = vmatprep.subr.bf16.mxu0 %v3210_v35 }
 0x2d6   :  { %3153 = vmatpush3.bf16.msra.mxu1 %v3215_v27 }
 0x2d7   :  { %3154 = vmatprep.subr.bf16.mxu1 %v3218_v51 }
 0x2d8   :  { %2673 = vmatpush3.bf16.msra.mxu0 %v3211_v33 }
 0x2d9   :  { %2674 = vmatprep.subr.bf16.mxu0 %v3213_v23 }
 0x2da   :  { %3155 = vmatpush3.bf16.msra.mxu1 %v3218_v51 }
 0x2db   :  { %3156 = vmatprep.subr.bf16.mxu1 %v3221_v55 }
 0x2dc   :  { %2675 = vmatpush3.bf16.msra.mxu0 %v3214_v40 }
 0x2dd   :  { %2676 = vmatprep.subr.bf16.mxu0 %v3216_v37 }
 0x2de   :  { %3157 = vmatpush3.bf16.msra.mxu1 %v3221_v55 }
 0x2df   :  { %3158 = vmatprep.subr.bf16.mxu1 %v3224_v50 }
 0x2e0   :  { %2677 = vmatpush3.bf16.msra.mxu0 %v3217_v46 }
 0x2e1   :  { %2678 = vmatprep.subr.bf16.mxu0 %v3219_v54 }
 0x2e2   :  { %3159 = vmatpush3.bf16.msra.mxu1 %v3224_v50 }
 0x2e4   :  { %2679 = vmatpush3.bf16.msra.mxu0 %v3220_v63 }
 0x2e5   :  { %2680 = vmatprep.subr.bf16.mxu0 %v3222_v19 }
 0x2e8   :  { %2681 = vmatpush3.bf16.msra.mxu0 %v3223_v45 }
 0x341   :  { %v1509_v2 = vpop.f32.mrf.mxu1 }
 0x343   :  { %v3003_v34 = vpop.f32.mrf.mxu1 }
 0x349   :  { %v1358_v26 = vpop.f32.mrf.mxu0 }
 0x34a   :  { %v1510_v0 = vadd.f32 %v1509_v2, %v1358_v26 }
 0x34b   :  { %v2968_v31 = vpop.f32.mrf.mxu0 }
 0x361   :  { %v1702_v38 = vpop.f32.mrf.mxu1 }
 0x363   :  { %v3073_v24 = vpop.f32.mrf.mxu1 }
 0x36a   :  { %v1613_v22 = vpop.f32.mrf.mxu0 }
 0x36b   :  { %v1614_v32 = vadd.f32 %v1613_v22, %v1510_v0 }
 0x36c   :  { %v3038_v8 = vpop.f32.mrf.mxu0 }
 0x36d   :  { %v1703_v61 = vadd.f32 %v1702_v38, %v1614_v32 }
 0x383   :  { %v1908_v59 = vpop.f32.mrf.mxu1 }
 0x385   :  { %v3143_v1 = vpop.f32.mrf.mxu1 }
 0x38b   :  { %v1821_v15 = vpop.f32.mrf.mxu0 }
 0x38c   :  { %v1822_v16 = vadd.f32 %v1821_v15, %v1703_v61 }
 0x38d   :  { %v3108_v4 = vpop.f32.mrf.mxu0 }
 0x38e   :  { %v1909_v5 = vadd.f32 %v1908_v59, %v1822_v16  ;;  %v2379_v4 = vld [vmem:[%s4240_s9] ss:$0 sm:$0xff]  ;;  %s3353_s9 = smov [#allocation11]  }
 0x38f   :  { %s2324_s28 = sshll.u32 %s3353_s9, 4  ;;  %s2325_s28 = int_to_ptr.vmem [resolvable:$true] %s2324_s28 }
 0x390   :  { %v1912_v6 = vmul.f32 0.001953125, %v1909_v5  ;;  %s3313_s29 = scalar_lea.vmem %s2325_s28, 512  ;;  %p3318_p7 = scmp.lt.s32.totalorder %s2325_s28, %s2325_s28 }
 0x391   :  { %p3314_p6 = scmp.ne.s32.totalorder %s2325_s28, %s3313_s29  ;;  %p3319_p8 = scmp.lt.s32.totalorder %s3313_s29, %s3313_s29 }
 0x392   :  { %v1913_v10 = vmul.f32 %v1912_v6, %v1912_v6 }
 0x393   :  { %p3320_p9 = por %p3319_p8, %p3318_p7 }
 0x394   :  { %v1915_v11 = vrot.slane %v1913_v10, 7 }
 0x395   :  { %p3321_p10 = pnand %p3320_p9, %p3314_p6 }
 0x396   :  { %v1917_v12 = vsub.f32 %v1912_v6, %v1915_v11 }
 0x398   :  { %v1918_v17 = vadd.f32 1e-05, %v1917_v12 }
 0x39a   :  { %3227 = vrsqrt.f32 %v1918_v17 }
 0x3a7   :  { %v3228_v18 = vpop.eup %3227 }
 0x3a8   :  { %v1927_v21 = vrot.slane %v3228_v18, %v4365_v20 }
 0x3aa   :  { %v1928_v25 = vcombine.high %v1927_v21, %v1927_v21  ;;  %v3229_v21 = vld [vmem:[#allocation3] sm:$0xff] }
 0x3ac   :  { %v1935_v30 = vrot.slane %v1928_v25, %v4365_v20 }
 0x3ae   :  { %v1937_v36 = vmul.f32 %v1935_v30, %v1246_v28 }
 0x3b0   :  { %v1938_v42 = vmul.f32 %v1937_v36, %v1912_v6  ;;  %v1944_v48 = vrot.slane %v1937_v36, %v4366_v44 }
 0x3b2   :  { %v1939_v49 = vsub.f32 %v1247_v39, %v1938_v42  ;;  %v1948_v52 = vmul.f32 %v1944_v48, %v4028_v9  ;;  %v1946_v60 = vmul.f32 %v1944_v48, %v4024_v29  ;;  %v1947_v62 = vmul.f32 %v1944_v48, %v4022_v47 }
 0x3b3   :  { %v1949_v3 = vmul.f32 %v1944_v48, %v4037_v43 }
 0x3b4   :  { %v1954_v57 = vrot.slane %v1939_v49, %v4366_v44  ;;  %v3230_v44 = vld [vmem:[#allocation3 + $0x8] sm:$0xff] }
 0x3b6   :  { %v1958_v7 = vadd.f32 %v1954_v57, %v1948_v52  ;;  %v1956_v13 = vadd.f32 %v1954_v57, %v1946_v60  ;;  %v1957_v35 = vadd.f32 %v1954_v57, %v1947_v62  ;;  %v1959_v33 = vadd.f32 %v1954_v57, %v1949_v3  ;;  %v3231_v62 = vld [vmem:[#allocation3 + $0x10] sm:$0xff] }
 0x3b8   :  { %vm1960_vm0 = vcmp.ge.f32.partialorder %v1956_v13, 0.0  ;;  %vm1961_vm2 = vcmp.ge.f32.partialorder %v1957_v35, 0.0  ;;  %v1964_v23 = vmul.f32 %v1956_v13, %v4367_v56  ;;  %v1965_v40 = vmul.f32 %v1957_v35, %v4367_v56 }
 0x3b9   :  { %vm1962_vm4 = vcmp.ge.f32.partialorder %v1958_v7, 0.0  ;;  %v1966_v9 = vmul.f32 %v1958_v7, %v4367_v56  ;;  %vm1963_vm5 = vcmp.ge.f32.partialorder %v1959_v33, 0.0  ;;  %v1967_v29 = vmul.f32 %v1959_v33, %v4367_v56 }
 0x3ba   :  { %v1968_v27 = vsel %vm1960_vm0, %v1956_v13, %v1964_v23  ;;  %v1969_v47 = vsel %vm1961_vm2, %v1957_v35, %v1965_v40  ;;  %v3232_v35 = vld [vmem:[#allocation3 + $0x18] sm:$0xff] }
 0x3bb   :  { %v2025_v37 = vrot.slane %v1968_v27, 7  ;;  %v2026_v43 = vrot.slane %v1969_v47, 7  ;;  %v2037_v46 = vrot.slane %v1968_v27, 1  ;;  %v2038_v51 = vrot.slane %v1969_v47, 1 }
 0x3bc   :  { %v2059_v54 = vpack.c.bf16 %v1969_v47, %v1968_v27  ;;  %v1970_v55 = vsel %vm1962_vm4, %v1958_v7, %v1966_v9  ;;  %v1971_v63 = vsel %vm1963_vm5, %v1959_v33, %v1967_v29 }
 0x3bd   :  { %v2027_v19 = vsel %vm202_vm1, %v2025_v37, %v2026_v43  ;;  %v2036_v45 = vsel %vm202_vm1, 0.0, %v2025_v37  ;;  %v2039_v50 = vsel %vm971_vm3, %v2037_v46, %v2038_v51  ;;  %v2040_v2 = vrot.slane %v1970_v55, 1 }
 0x3be   :  { %2245 = vmatprep.mubr.bf16.mxu0 %v2059_v54  ;;  %v2406_v34 = vpack.c.bf16 %v2027_v19, %v2036_v45  ;;  %v2042_v26 = vrot.slane %v1971_v63, 1  ;;  %v2030_v38 = vrot.slane %v1971_v63, 7  ;;  %v2060_v24 = vpack.c.bf16 %v1971_v63, %v1970_v55 }
 0x3bf   :  { %v2041_v31 = vsel %vm971_vm3, %v2038_v51, %v2040_v2  ;;  %v2028_v22 = vrot.slane %v1970_v55, 7 }
 0x3c0   :  { %2407 = vmatmul.mubr.msk.bf16.vlgmr.msra.gmra.mxu0 %vm3914_vm11, %v2406_v34  ;;  %v2414_v8 = vpack.c.bf16 %v2041_v31, %v2039_v50  ;;  %v2043_v59 = vsel %vm971_vm3, %v2040_v2, %v2042_v26  ;;  %v2048_v0 = vsel %vm971_vm3, %v2042_v26, 0.0 }
 0x3c1   :  { %2253 = vmatprep.mubr.bf16.mxu0 %v2060_v24  ;;  %v2418_v1 = vpack.c.bf16 %v2048_v0, %v2043_v59  ;;  %v2029_v32 = vsel %vm202_vm1, %v2026_v43, %v2028_v22  ;;  %v2031_v61 = vsel %vm202_vm1, %v2028_v22, %v2030_v38 }
 0x3c2   :  { %3160 = vmatprep.mubr.msk.bf16.mxu1 %vm3923_vm12, %v2414_v8  ;;  %v2410_v15 = vpack.c.bf16 %v2031_v61, %v2029_v32 }
 0x3c3   :  { %3161 = vmatmul.mubr.msk.bf16.vlgmr.msra.gmra.mxu1 %vm3934_vm13, %v2418_v1 }
 0x3c8   :  { %2411 = vmatmul.mubr.msk.bf16.gmra.mxu0 %vm3950_vm15, %v2410_v15 }
 0x480   :  { %v2682_v14 = vpop.f32.mrf.mxu0 }
 0x482   :  { %v2683_v16 = vpop.f32.mrf.mxu0 }
 0x483   :  { %v3162_v5 = vpop.f32.mrf.mxu1  ;;  %v2684_v53 = vadd.f32 %v2683_v16, %v2682_v14 }
 0x484   :  { %v2685_v6 = vpop.f32.mrf.mxu0 }
 0x485   :  { %v2248_v10 = vadd.f32 %v2684_v53, %v2379_v4  ;;  %v2296_v41 = vpop.f32.mrf.mxu1 }
 0x486   :  { %v2686_v11 = vpop.f32.mrf.mxu0 }
 0x487   :  { %v2297_v12 = vadd.f32 %v2296_v41, %v2248_v10  ;;  %v3163_v17 = vpop.f32.mrf.mxu1  ;;  %v2687_v18 = vadd.f32 %v2686_v11, %v2685_v6 }
 0x488   :  { %v2688_v20 = vpop.f32.mrf.mxu0 }
 0x489   :  { %v2311_v25 = vadd.f32 %v3229_v21, %v2297_v12  ;;  %v2251_v58 = vadd.f32 %v2687_v18, %v2379_v4  ;;  %v2299_v28 = vpop.f32.mrf.mxu1 }
 0x48a   :  { %v2689_v30 = vpop.f32.mrf.mxu0 }
 0x48b   :  { %2315 = vst [vmem:[#allocation11] sm:$0xff] %v2311_v25  ;;  %v2300_v36 = vadd.f32 %v2299_v28, %v2251_v58  ;;  %v2690_v39 = vadd.f32 %v2689_v30, %v2688_v20 }
 0x48c   :  { %v2691_v42 = vpop.f32.mrf.mxu0 }
 0x48d   :  { %v2312_v48 = vadd.f32 %v3230_v44, %v2300_v36  ;;  %v2256_v49 = vadd.f32 %v2690_v39, %v2379_v4 }
 0x48e   :  { %v2692_v52 = vpop.f32.mrf.mxu0 }
 0x48f   :  { %2316 = vst [vmem:[#allocation11 + $0x8] sm:$0xff] %v2312_v48  ;;  %v2305_v57 = vadd.f32 %v3162_v5, %v2256_v49  ;;  %v2693_v60 = vadd.f32 %v2692_v52, %v2691_v42 }
 0x491   :  { %v2313_v3 = vadd.f32 %v3231_v62, %v2305_v57  ;;  %v2259_v7 = vadd.f32 %v2693_v60, %v2379_v4 }
 0x493   :  { %2317 = vst [vmem:[#allocation11 + $0x10] sm:$0xff] %v2313_v3  ;;  %v2308_v13 = vadd.f32 %v3163_v17, %v2259_v7 }
 0x495   :  { %v2314_v33 = vadd.f32 %v3232_v35, %v2308_v13 }
 0x497   :  { %2318 = vst [vmem:[#allocation11 + $0x18] sm:$0xff] %v2314_v33 }
 0x498   :  { %3324 = shalt.err (!%p3321_p10)
}
 0x499   :  { %2330 = dma.vmem_to_hbm [thread:$0]  %s2325_s28, 512, %s4242_s11, [#allocation5], %s3343_s22, %s3343_s22, %s3344_s23  }
 0x49a   :  { %3339 = dma.done.wait [#allocation5], 512  }
 0x49b   :  { %3340 = vsyncadd [#allocation5], 4294966784 }
 0x49c   :  { %2334 = vsyncpa [#allocation4], 1 }
 0x49d   :  { %2335 = vsyncpa [#allocation7], 1 }
 0x49e   :  { %2336 = vsyncpa [#allocation10], 1 }
 0x49f   :  { %2337 = vsyncpa [#allocation5], 1 }

</bundles_post_ra>
